<compile_context>
chip_gen: v7x
topology: tpu7x:2x2x1
jax: 0.10.0
libtpu: 0.0.40
codegen_flags: <defaults>
</compile_context>

<pallas_src>
import functools

import jax
import jax.numpy as jnp
from jax.experimental import pallas as pl
from jax.experimental.pallas import tpu as pltpu

LRELU_SLOPE = 0.2
LANE = 128          # TPU lane width; Cout is padded to this for lane-dense stores
_M_BLOCK = 512      # tile the M (=N*Ho*Wo) dim only beyond this many rows


# ----------------------------------------------------------------------------
# Pallas kernel: fused (patches @ W') + bias', per-channel-slope LeakyReLU.
# ----------------------------------------------------------------------------
def _conv_mm_kernel(x_ref, w_ref, e_ref, o_ref):
    # e_ref: (2, Cp)  row 0 = folded bias, row 1 = per-channel LeakyReLU slope.
    acc = jnp.dot(x_ref[...], w_ref[...], preferred_element_type=jnp.float32)
    e = e_ref[...]
    acc = acc + e[0:1, :]
    # LeakyReLU as a single VPU max; slope==1.0 -> identity (no activation).
    o_ref[...] = jnp.maximum(acc, e[1:2, :] * acc).astype(o_ref.dtype)


def _round_up(x, m):
    return (x + m - 1) // m * m


def fused_conv_matmul(x_col, w, bias, slope):
    """x_col: (M, K) f32, w: (K, C), bias/slope: (C,). Returns (M, C) f32.

    BN is pre-folded into (w, bias). Cout is zero-padded to 128 lanes so the
    kernel's output stores are unmasked; padded channels have zero weight/bias
    and slope 1.0, and are sliced off before returning.
    """
    M, K = x_col.shape
    C = w.shape[1]
    Cp = _round_up(C, LANE)

    wp = jnp.pad(w.astype(jnp.float32), ((0, 0), (0, Cp - C)))
    bp = jnp.pad(bias.reshape(1, C).astype(jnp.float32), ((0, 0), (0, Cp - C)))
    sp = jnp.pad(slope.reshape(1, C).astype(jnp.float32), ((0, 0), (0, Cp - C)),
                 constant_values=1.0)
    ep = jnp.concatenate([bp, sp], axis=0)              # (2, Cp)

    # Note (v6e/v7x option): x_col/wp could be fed to the MXU as bf16 with f32
    # accumulation; kept f32 here to preserve exact reference numerics.
    if M > _M_BLOCK:
        bm = _M_BLOCK
        Mp = _round_up(M, bm)
        xk = jnp.pad(x_col, ((0, Mp - M), (0, 0)))
    else:                       # full-array block: no M padding copy needed
        bm, Mp, xk = M, M, x_col
    grid = (Mp // bm,)

    cost = pl.CostEstimate(
        flops=2 * Mp * K * Cp,
        transcendentals=0,
        bytes_accessed=4 * (Mp * K + K * Cp + 2 * Cp + Mp * Cp),
    )

    out = pl.pallas_call(
        _conv_mm_kernel,
        out_shape=jax.ShapeDtypeStruct((Mp, Cp), jnp.float32),
        grid=grid,
        in_specs=[
            pl.BlockSpec((bm, K), lambda i: (i, 0)),
            pl.BlockSpec((K, Cp), lambda i: (0, 0)),
            pl.BlockSpec((2, Cp), lambda i: (0, 0)),
        ],
        out_specs=pl.BlockSpec((bm, Cp), lambda i: (i, 0)),
        compiler_params=pltpu.CompilerParams(dimension_semantics=("parallel",)),
        cost_estimate=cost,
    )(xk, wp, ep)
    return out[:M, :C]


# ----------------------------------------------------------------------------
# Glue: im2col patch extraction + BN fold + layer wrappers (plain JAX).
# ----------------------------------------------------------------------------
def im2col(x_nhwc, k, stride, pad):
    N, H, W, C = x_nhwc.shape
    xp = jnp.pad(x_nhwc, ((0, 0), (pad, pad), (pad, pad), (0, 0)))
    Ho = (H + 2 * pad - k) // stride + 1
    Wo = (W + 2 * pad - k) // stride + 1
    cols = []
    for di in range(k):
        for dj in range(k):
            cols.append(
                xp[:, di:di + stride * (Ho - 1) + 1:stride,
                      dj:dj + stride * (Wo - 1) + 1:stride, :]
            )                                            # (N, Ho, Wo, C)
    col = jnp.stack(cols, axis=3)                        # (N, Ho, Wo, k*k, C)
    return col.reshape(N * Ho * Wo, k * k * C), N, Ho, Wo


def _fold_bn(wmat, b, bn):
    """Fold eval-mode BatchNorm into the matmul weights/bias."""
    scale = bn["gamma"] * jax.lax.rsqrt(bn["var"] + bn["eps"])
    w_f = wmat * scale[None, :]
    b_f = b * scale + (bn["beta"] - bn["mean"] * scale)
    return w_f, b_f


def conv2d_fused(x_nhwc, conv_p, stride, pad, bn=None, lrelu=False):
    w, b = conv_p["w"], conv_p["b"]                      # w: (kh, kw, Cin, Cout)
    k, _, cin, cout = w.shape
    col, N, Ho, Wo = im2col(x_nhwc, k, stride, pad)
    wmat = w.reshape(k * k * cin, cout)
    if bn is not None:
        wmat, bias = _fold_bn(wmat, b, bn)
    else:
        bias = b
    slope = jnp.full((cout,), LRELU_SLOPE if lrelu else 1.0, jnp.float32)
    out = fused_conv_matmul(col, wmat, bias, slope)
    return out.reshape(N, Ho, Wo, cout)


def heads_fused(y_nhwc, out1_conv, out2_conv0, out2_bn):
    """out1.conv (no BN/act) and out2.conv0 (BN + LReLU) share the same im2col
    of y -> one fused matmul with per-channel slopes."""
    w0, b0 = out2_conv0["w"], out2_conv0["b"]            # (4,4,Cin,32)
    w1, b1 = out1_conv["w"], out1_conv["b"]              # (4,4,Cin,1)
    k, _, cin, c0 = w0.shape
    col, N, Ho, Wo = im2col(y_nhwc, k, stride=1, pad=2)
    w0m, b0f = _fold_bn(w0.reshape(k * k * cin, c0), b0, out2_bn)
    w1m = w1.reshape(k * k * cin, 1)
    wmat = jnp.concatenate([w0m, w1m], axis=1)           # (K, c0+1)
    bias = jnp.concatenate([b0f, b1], axis=0)            # (c0+1,)
    slope = jnp.concatenate(
        [jnp.full((c0,), LRELU_SLOPE, jnp.float32), jnp.ones((1,), jnp.float32)],
        axis=0)
    out = fused_conv_matmul(col, wmat, bias, slope)      # (M, c0+1)
    o2 = out[:, :c0].reshape(N, Ho, Wo, c0)
    o1 = out[:, c0:c0 + 1].reshape(N, Ho, Wo, 1)
    return o1, o2


# ----------------------------------------------------------------------------
# Parameter init (deterministic, synthetic) and forward pass.
# ----------------------------------------------------------------------------
def init_discriminator(key, in_channels, ndf=32, n_layers=3):
    keys = iter(jax.random.split(key, 128))

    def conv(cin, cout, k=4):
        w = jax.random.normal(next(keys), (k, k, cin, cout), jnp.float32) * 0.05
        b = jax.random.normal(next(keys), (cout,), jnp.float32) * 0.05
        return {"w": w, "b": b}

    def bn(c):
        return {
            "gamma": 1.0 + 0.1 * jax.random.normal(next(keys), (c,), jnp.float32),
            "beta": 0.1 * jax.random.normal(next(keys), (c,), jnp.float32),
            "mean": 0.1 * jax.random.normal(next(keys), (c,), jnp.float32),
            "var": jnp.abs(jax.random.normal(next(keys), (c,), jnp.float32)) + 0.5,
            "eps": 1e-5,
        }

    model = [{"conv": conv(in_channels, ndf), "bn": None}]
    nf_mult = 1
    for n in range(1, n_layers):
        nf_prev, nf_mult = nf_mult, min(2 ** n, 4)
        model.append({"conv": conv(ndf * nf_prev, ndf * nf_mult),
                      "bn": bn(ndf * nf_mult)})
    nf_prev, nf_mult = nf_mult, min(2 ** n_layers, 4)
    out1 = {"conv": conv(ndf * nf_prev, 1)}
    out2 = {"conv0": conv(ndf * nf_prev, ndf * nf_mult),
            "bn": bn(ndf * nf_mult),
            "conv1": conv(ndf * nf_mult, 1)}
    return {"model": model, "out1": out1, "out2": out2}


def discriminator_forward(x_nchw, params, multilayer=True):
    # kernel_size=4; padding=2 on all convs (ceil((4-1)/2)=2 for the heads)
    x = jnp.transpose(x_nchw, (0, 2, 3, 1)).astype(jnp.float32)   # NCHW -> NHWC

    # self.model : conv(s=2)+LReLU, then [conv(s=2)+BN+LReLU] * (n_layers-1)
    y = x
    for layer in params["model"]:
        y = conv2d_fused(y, layer["conv"], stride=2, pad=2,
                         bn=layer["bn"], lrelu=True)

    # out1 conv and out2.conv0 fused into one kernel (shared im2col of y)
    o1, o2 = heads_fused(y, params["out1"]["conv"],
                         params["out2"]["conv0"], params["out2"]["bn"])
    # out2.conv1 : conv(s=1), no BN, no activation
    o2 = conv2d_fused(o2, params["out2"]["conv1"], stride=1, pad=2,
                      bn=None, lrelu=False)
    o2_flat = jnp.transpose(o2, (0, 3, 1, 2)).reshape(-1)          # torch .view(-1)

    if multilayer:
        o1_flat = jnp.transpose(o1, (0, 3, 1, 2)).reshape(-1)
        return jnp.concatenate([o1_flat, o2_flat], axis=0)
    return o2_flat


if __name__ == "__main__":
    key = jax.random.PRNGKey(0)
    k_param, k_x = jax.random.split(key)

    in_channels, ndf, n_layers = 4, 8, 3
    batch, H, W = 2, 16, 16

    params = init_discriminator(k_param, in_channels, ndf=ndf, n_layers=n_layers)
    x = jax.random.normal(k_x, (batch, in_channels, H, W), jnp.float32)

    fwd = jax.jit(functools.partial(discriminator_forward, multilayer=True))
    out = jax.block_until_ready(fwd(x, params))

    # Expected element count: out1 (2,1,4,4)=32  +  out2 (2,1,5,5)=50  = 82
    assert out.ndim == 1 and out.shape[0] == 82, out.shape
    assert bool(jnp.all(jnp.isfinite(out)))
    print("KERNEL_OK")
</pallas_src>

<mosaic_0001>
module attributes {stable_mosaic.version = 11 : i64} {
  func.func @_conv_mm_kernel(%arg0: i32, %arg1: memref<162x64xf32, #tpu.memory_space<vmem>>, %arg2: memref<64x128xf32, #tpu.memory_space<vmem>>, %arg3: memref<2x128xf32, #tpu.memory_space<vmem>>, %arg4: memref<162x128xf32, #tpu.memory_space<vmem>>) attributes {dimension_semantics = [#tpu.dimension_semantics<parallel>], iteration_bounds = array<i64: 1>, scalar_prefetch = 0 : i64, scratch_operands = 0 : i64, tpu.core_type = #tpu.core_type<tc>, window_params = [{transform_indices = @transform_0, window_bounds = array<i64: 162, 64>}, {pipeline_mode = #tpu.pipeline_mode<synchronous>, transform_indices = @transform_1, window_bounds = array<i64: 64, 128>}, {pipeline_mode = #tpu.pipeline_mode<synchronous>, transform_indices = @transform_2, window_bounds = array<i64: 2, 128>}, {transform_indices = @transform_3, window_bounds = array<i64: 162, 128>}]} {
    %c0 = arith.constant 0 : index
    %c0_0 = arith.constant 0 : index
    %0 = vector.load %arg1[%c0, %c0_0] : memref<162x64xf32, #tpu.memory_space<vmem>>, vector<162x64xf32>
    %c0_1 = arith.constant 0 : index
    %c0_2 = arith.constant 0 : index
    %1 = vector.load %arg2[%c0_1, %c0_2] : memref<64x128xf32, #tpu.memory_space<vmem>>, vector<64x128xf32>
    %cst = arith.constant dense<0.000000e+00> : vector<162x128xf32>
    %2 = tpu.matmul %0, %1, %cst {dimension_numbers = #tpu.dot_dimension_numbers<[1], [0], [0], [1], [0, 0, 1, 1], [], []>} : vector<162x64xf32>, vector<64x128xf32>, vector<162x128xf32> -> vector<162x128xf32>
    %c0_3 = arith.constant 0 : index
    %c0_4 = arith.constant 0 : index
    %3 = vector.load %arg3[%c0_3, %c0_4] : memref<2x128xf32, #tpu.memory_space<vmem>>, vector<2x128xf32>
    %4 = vector.extract_strided_slice %3 {offsets = [0, 0], sizes = [1, 128], strides = [1, 1]} : vector<2x128xf32> to vector<1x128xf32>
    %5 = vector.broadcast %4 : vector<1x128xf32> to vector<162x128xf32>
    %6 = arith.addf %2, %5 : vector<162x128xf32>
    %7 = vector.extract_strided_slice %3 {offsets = [1, 0], sizes = [1, 128], strides = [1, 1]} : vector<2x128xf32> to vector<1x128xf32>
    %8 = vector.broadcast %7 : vector<1x128xf32> to vector<162x128xf32>
    %9 = arith.mulf %8, %6 : vector<162x128xf32>
    %10 = arith.maximumf %6, %9 : vector<162x128xf32>
    %c0_5 = arith.constant 0 : index
    %c0_6 = arith.constant 0 : index
    %11 = vector.load %arg4[%c0_5, %c0_6] : memref<162x128xf32, #tpu.memory_space<vmem>>, vector<162x128xf32>
    tpu.vector_store %arg4[%c0_5, %c0_6], %10 {strides = array<i32>} : memref<162x128xf32, #tpu.memory_space<vmem>>, vector<162x128xf32>,
    return
  }
  func.func @transform_0(%arg0: i32) -> (i32, i32) {
    %c0_i32 = arith.constant 0 : i32
    %c0_i32_0 = arith.constant 0 : i32
    return %arg0, %c0_i32 : i32, i32
  }
  func.func @transform_1(%arg0: i32) -> (i32, i32) {
    %c0_i32 = arith.constant 0 : i32
    %c0_i32_0 = arith.constant 0 : i32
    %c0_i32_1 = arith.constant 0 : i32
    return %c0_i32, %c0_i32_0 : i32, i32
  }
  func.func @transform_2(%arg0: i32) -> (i32, i32) {
    %c0_i32 = arith.constant 0 : i32
    %c0_i32_0 = arith.constant 0 : i32
    %c0_i32_1 = arith.constant 0 : i32
    return %c0_i32, %c0_i32_0 : i32, i32
  }
  func.func @transform_3(%arg0: i32) -> (i32, i32) {
    %c0_i32 = arith.constant 0 : i32
    %c0_i32_0 = arith.constant 0 : i32
    return %arg0, %c0_i32 : i32, i32
  }
}

module attributes {stable_mosaic.version = 11 : i64} {
  func.func @_conv_mm_kernel(%arg0: i32, %arg1: memref<50x128xf32, #tpu.memory_space<vmem>>, %arg2: memref<128x128xf32, #tpu.memory_space<vmem>>, %arg3: memref<2x128xf32, #tpu.memory_space<vmem>>, %arg4: memref<50x128xf32, #tpu.memory_space<vmem>>) attributes {dimension_semantics = [#tpu.dimension_semantics<parallel>], iteration_bounds = array<i64: 1>, scalar_prefetch = 0 : i64, scratch_operands = 0 : i64, tpu.core_type = #tpu.core_type<tc>, window_params = [{transform_indices = @transform_0, window_bounds = array<i64: 50, 128>}, {pipeline_mode = #tpu.pipeline_mode<synchronous>, transform_indices = @transform_1, window_bounds = array<i64: 128, 128>}, {pipeline_mode = #tpu.pipeline_mode<synchronous>, transform_indices = @transform_2, window_bounds = array<i64: 2, 128>}, {transform_indices = @transform_3, window_bounds = array<i64: 50, 128>}]} {
    %c0 = arith.constant 0 : index
    %c0_0 = arith.constant 0 : index
    %0 = vector.load %arg1[%c0, %c0_0] : memref<50x128xf32, #tpu.memory_space<vmem>>, vector<50x128xf32>
    %c0_1 = arith.constant 0 : index
    %c0_2 = arith.constant 0 : index
    %1 = vector.load %arg2[%c0_1, %c0_2] : memref<128x128xf32, #tpu.memory_space<vmem>>, vector<128x128xf32>
    %cst = arith.constant dense<0.000000e+00> : vector<50x128xf32>
    %2 = tpu.matmul %0, %1, %cst {dimension_numbers = #tpu.dot_dimension_numbers<[1], [0], [0], [1], [0, 0, 1, 1], [], []>} : vector<50x128xf32>, vector<128x128xf32>, vector<50x128xf32> -> vector<50x128xf32>
    %c0_3 = arith.constant 0 : index
    %c0_4 = arith.constant 0 : index
    %3 = vector.load %arg3[%c0_3, %c0_4] : memref<2x128xf32, #tpu.memory_space<vmem>>, vector<2x128xf32>
    %4 = vector.extract_strided_slice %3 {offsets = [0, 0], sizes = [1, 128], strides = [1, 1]} : vector<2x128xf32> to vector<1x128xf32>
    %5 = vector.broadcast %4 : vector<1x128xf32> to vector<50x128xf32>
    %6 = arith.addf %2, %5 : vector<50x128xf32>
    %7 = vector.extract_strided_slice %3 {offsets = [1, 0], sizes = [1, 128], strides = [1, 1]} : vector<2x128xf32> to vector<1x128xf32>
    %8 = vector.broadcast %7 : vector<1x128xf32> to vector<50x128xf32>
    %9 = arith.mulf %8, %6 : vector<50x128xf32>
    %10 = arith.maximumf %6, %9 : vector<50x128xf32>
    %c0_5 = arith.constant 0 : index
    %c0_6 = arith.constant 0 : index
    %11 = vector.load %arg4[%c0_5, %c0_6] : memref<50x128xf32, #tpu.memory_space<vmem>>, vector<50x128xf32>
    tpu.vector_store %arg4[%c0_5, %c0_6], %10 {strides = array<i32>} : memref<50x128xf32, #tpu.memory_space<vmem>>, vector<50x128xf32>,
    return
  }
  func.func @transform_0(%arg0: i32) -> (i32, i32) {
    %c0_i32 = arith.constant 0 : i32
    %c0_i32_0 = arith.constant 0 : i32
    return %arg0, %c0_i32 : i32, i32
  }
  func.func @transform_1(%arg0: i32) -> (i32, i32) {
    %c0_i32 = arith.constant 0 : i32
    %c0_i32_0 = arith.constant 0 : i32
    %c0_i32_1 = arith.constant 0 : i32
    return %c0_i32, %c0_i32_0 : i32, i32
  }
  func.func @transform_2(%arg0: i32) -> (i32, i32) {
    %c0_i32 = arith.constant 0 : i32
    %c0_i32_0 = arith.constant 0 : i32
    %c0_i32_1 = arith.constant 0 : i32
    return %c0_i32, %c0_i32_0 : i32, i32
  }
  func.func @transform_3(%arg0: i32) -> (i32, i32) {
    %c0_i32 = arith.constant 0 : i32
    %c0_i32_0 = arith.constant 0 : i32
    return %arg0, %c0_i32 : i32, i32
  }
}

module attributes {stable_mosaic.version = 11 : i64} {
  func.func @_conv_mm_kernel(%arg0: i32, %arg1: memref<18x256xf32, #tpu.memory_space<vmem>>, %arg2: memref<256x128xf32, #tpu.memory_space<vmem>>, %arg3: memref<2x128xf32, #tpu.memory_space<vmem>>, %arg4: memref<18x128xf32, #tpu.memory_space<vmem>>) attributes {dimension_semantics = [#tpu.dimension_semantics<parallel>], iteration_bounds = array<i64: 1>, scalar_prefetch = 0 : i64, scratch_operands = 0 : i64, tpu.core_type = #tpu.core_type<tc>, window_params = [{transform_indices = @transform_0, window_bounds = array<i64: 18, 256>}, {pipeline_mode = #tpu.pipeline_mode<synchronous>, transform_indices = @transform_1, window_bounds = array<i64: 256, 128>}, {pipeline_mode = #tpu.pipeline_mode<synchronous>, transform_indices = @transform_2, window_bounds = array<i64: 2, 128>}, {transform_indices = @transform_3, window_bounds = array<i64: 18, 128>}]} {
    %c0 = arith.constant 0 : index
    %c0_0 = arith.constant 0 : index
    %0 = vector.load %arg1[%c0, %c0_0] : memref<18x256xf32, #tpu.memory_space<vmem>>, vector<18x256xf32>
    %c0_1 = arith.constant 0 : index
    %c0_2 = arith.constant 0 : index
    %1 = vector.load %arg2[%c0_1, %c0_2] : memref<256x128xf32, #tpu.memory_space<vmem>>, vector<256x128xf32>
    %cst = arith.constant dense<0.000000e+00> : vector<18x128xf32>
    %2 = tpu.matmul %0, %1, %cst {dimension_numbers = #tpu.dot_dimension_numbers<[1], [0], [0], [1], [0, 0, 1, 1], [], []>} : vector<18x256xf32>, vector<256x128xf32>, vector<18x128xf32> -> vector<18x128xf32>
    %c0_3 = arith.constant 0 : index
    %c0_4 = arith.constant 0 : index
    %3 = vector.load %arg3[%c0_3, %c0_4] : memref<2x128xf32, #tpu.memory_space<vmem>>, vector<2x128xf32>
    %4 = vector.extract_strided_slice %3 {offsets = [0, 0], sizes = [1, 128], strides = [1, 1]} : vector<2x128xf32> to vector<1x128xf32>
    %5 = vector.broadcast %4 : vector<1x128xf32> to vector<18x128xf32>
    %6 = arith.addf %2, %5 : vector<18x128xf32>
    %7 = vector.extract_strided_slice %3 {offsets = [1, 0], sizes = [1, 128], strides = [1, 1]} : vector<2x128xf32> to vector<1x128xf32>
    %8 = vector.broadcast %7 : vector<1x128xf32> to vector<18x128xf32>
    %9 = arith.mulf %8, %6 : vector<18x128xf32>
    %10 = arith.maximumf %6, %9 : vector<18x128xf32>
    %c0_5 = arith.constant 0 : index
    %c0_6 = arith.constant 0 : index
    %11 = vector.load %arg4[%c0_5, %c0_6] : memref<18x128xf32, #tpu.memory_space<vmem>>, vector<18x128xf32>
    tpu.vector_store %arg4[%c0_5, %c0_6], %10 {strides = array<i32>} : memref<18x128xf32, #tpu.memory_space<vmem>>, vector<18x128xf32>,
    return
  }
  func.func @transform_0(%arg0: i32) -> (i32, i32) {
    %c0_i32 = arith.constant 0 : i32
    %c0_i32_0 = arith.constant 0 : i32
    return %arg0, %c0_i32 : i32, i32
  }
  func.func @transform_1(%arg0: i32) -> (i32, i32) {
    %c0_i32 = arith.constant 0 : i32
    %c0_i32_0 = arith.constant 0 : i32
    %c0_i32_1 = arith.constant 0 : i32
    return %c0_i32, %c0_i32_0 : i32, i32
  }
  func.func @transform_2(%arg0: i32) -> (i32, i32) {
    %c0_i32 = arith.constant 0 : i32
    %c0_i32_0 = arith.constant 0 : i32
    %c0_i32_1 = arith.constant 0 : i32
    return %c0_i32, %c0_i32_0 : i32, i32
  }
  func.func @transform_3(%arg0: i32) -> (i32, i32) {
    %c0_i32 = arith.constant 0 : i32
    %c0_i32_0 = arith.constant 0 : i32
    return %arg0, %c0_i32 : i32, i32
  }
}

module attributes {stable_mosaic.version = 11 : i64} {
  func.func @_conv_mm_kernel(%arg0: i32, %arg1: memref<32x512xf32, #tpu.memory_space<vmem>>, %arg2: memref<512x128xf32, #tpu.memory_space<vmem>>, %arg3: memref<2x128xf32, #tpu.memory_space<vmem>>, %arg4: memref<32x128xf32, #tpu.memory_space<vmem>>) attributes {dimension_semantics = [#tpu.dimension_semantics<parallel>], iteration_bounds = array<i64: 1>, scalar_prefetch = 0 : i64, scratch_operands = 0 : i64, tpu.core_type = #tpu.core_type<tc>, window_params = [{transform_indices = @transform_0, window_bounds = array<i64: 32, 512>}, {pipeline_mode = #tpu.pipeline_mode<synchronous>, transform_indices = @transform_1, window_bounds = array<i64: 512, 128>}, {pipeline_mode = #tpu.pipeline_mode<synchronous>, transform_indices = @transform_2, window_bounds = array<i64: 2, 128>}, {transform_indices = @transform_3, window_bounds = array<i64: 32, 128>}]} {
    %c0 = arith.constant 0 : index
    %c0_0 = arith.constant 0 : index
    %0 = vector.load %arg1[%c0, %c0_0] : memref<32x512xf32, #tpu.memory_space<vmem>>, vector<32x512xf32>
    %c0_1 = arith.constant 0 : index
    %c0_2 = arith.constant 0 : index
    %1 = vector.load %arg2[%c0_1, %c0_2] : memref<512x128xf32, #tpu.memory_space<vmem>>, vector<512x128xf32>
    %cst = arith.constant dense<0.000000e+00> : vector<32x128xf32>
    %2 = tpu.matmul %0, %1, %cst {dimension_numbers = #tpu.dot_dimension_numbers<[1], [0], [0], [1], [0, 0, 1, 1], [], []>} : vector<32x512xf32>, vector<512x128xf32>, vector<32x128xf32> -> vector<32x128xf32>
    %c0_3 = arith.constant 0 : index
    %c0_4 = arith.constant 0 : index
    %3 = vector.load %arg3[%c0_3, %c0_4] : memref<2x128xf32, #tpu.memory_space<vmem>>, vector<2x128xf32>
    %4 = vector.extract_strided_slice %3 {offsets = [0, 0], sizes = [1, 128], strides = [1, 1]} : vector<2x128xf32> to vector<1x128xf32>
    %5 = vector.broadcast %4 : vector<1x128xf32> to vector<32x128xf32>
    %6 = arith.addf %2, %5 : vector<32x128xf32>
    %7 = vector.extract_strided_slice %3 {offsets = [1, 0], sizes = [1, 128], strides = [1, 1]} : vector<2x128xf32> to vector<1x128xf32>
    %8 = vector.broadcast %7 : vector<1x128xf32> to vector<32x128xf32>
    %9 = arith.mulf %8, %6 : vector<32x128xf32>
    %10 = arith.maximumf %6, %9 : vector<32x128xf32>
    %c0_5 = arith.constant 0 : index
    %c0_6 = arith.constant 0 : index
    %11 = vector.load %arg4[%c0_5, %c0_6] : memref<32x128xf32, #tpu.memory_space<vmem>>, vector<32x128xf32>
    tpu.vector_store %arg4[%c0_5, %c0_6], %10 {strides = array<i32>} : memref<32x128xf32, #tpu.memory_space<vmem>>, vector<32x128xf32>,
    return
  }
  func.func @transform_0(%arg0: i32) -> (i32, i32) {
    %c0_i32 = arith.constant 0 : i32
    %c0_i32_0 = arith.constant 0 : i32
    return %arg0, %c0_i32 : i32, i32
  }
  func.func @transform_1(%arg0: i32) -> (i32, i32) {
    %c0_i32 = arith.constant 0 : i32
    %c0_i32_0 = arith.constant 0 : i32
    %c0_i32_1 = arith.constant 0 : i32
    return %c0_i32, %c0_i32_0 : i32, i32
  }
  func.func @transform_2(%arg0: i32) -> (i32, i32) {
    %c0_i32 = arith.constant 0 : i32
    %c0_i32_0 = arith.constant 0 : i32
    %c0_i32_1 = arith.constant 0 : i32
    return %c0_i32, %c0_i32_0 : i32, i32
  }
  func.func @transform_3(%arg0: i32) -> (i32, i32) {
    %c0_i32 = arith.constant 0 : i32
    %c0_i32_0 = arith.constant 0 : i32
    return %arg0, %c0_i32 : i32, i32
  }
}

module attributes {stable_mosaic.version = 11 : i64} {
  func.func @_conv_mm_kernel(%arg0: i32, %arg1: memref<50x512xf32, #tpu.memory_space<vmem>>, %arg2: memref<512x128xf32, #tpu.memory_space<vmem>>, %arg3: memref<2x128xf32, #tpu.memory_space<vmem>>, %arg4: memref<50x128xf32, #tpu.memory_space<vmem>>) attributes {dimension_semantics = [#tpu.dimension_semantics<parallel>], iteration_bounds = array<i64: 1>, scalar_prefetch = 0 : i64, scratch_operands = 0 : i64, tpu.core_type = #tpu.core_type<tc>, window_params = [{transform_indices = @transform_0, window_bounds = array<i64: 50, 512>}, {pipeline_mode = #tpu.pipeline_mode<synchronous>, transform_indices = @transform_1, window_bounds = array<i64: 512, 128>}, {pipeline_mode = #tpu.pipeline_mode<synchronous>, transform_indices = @transform_2, window_bounds = array<i64: 2, 128>}, {transform_indices = @transform_3, window_bounds = array<i64: 50, 128>}]} {
    %c0 = arith.constant 0 : index
    %c0_0 = arith.constant 0 : index
    %0 = vector.load %arg1[%c0, %c0_0] : memref<50x512xf32, #tpu.memory_space<vmem>>, vector<50x512xf32>
    %c0_1 = arith.constant 0 : index
    %c0_2 = arith.constant 0 : index
    %1 = vector.load %arg2[%c0_1, %c0_2] : memref<512x128xf32, #tpu.memory_space<vmem>>, vector<512x128xf32>
    %cst = arith.constant dense<0.000000e+00> : vector<50x128xf32>
    %2 = tpu.matmul %0, %1, %cst {dimension_numbers = #tpu.dot_dimension_numbers<[1], [0], [0], [1], [0, 0, 1, 1], [], []>} : vector<50x512xf32>, vector<512x128xf32>, vector<50x128xf32> -> vector<50x128xf32>
    %c0_3 = arith.constant 0 : index
    %c0_4 = arith.constant 0 : index
    %3 = vector.load %arg3[%c0_3, %c0_4] : memref<2x128xf32, #tpu.memory_space<vmem>>, vector<2x128xf32>
    %4 = vector.extract_strided_slice %3 {offsets = [0, 0], sizes = [1, 128], strides = [1, 1]} : vector<2x128xf32> to vector<1x128xf32>
    %5 = vector.broadcast %4 : vector<1x128xf32> to vector<50x128xf32>
    %6 = arith.addf %2, %5 : vector<50x128xf32>
    %7 = vector.extract_strided_slice %3 {offsets = [1, 0], sizes = [1, 128], strides = [1, 1]} : vector<2x128xf32> to vector<1x128xf32>
    %8 = vector.broadcast %7 : vector<1x128xf32> to vector<50x128xf32>
    %9 = arith.mulf %8, %6 : vector<50x128xf32>
    %10 = arith.maximumf %6, %9 : vector<50x128xf32>
    %c0_5 = arith.constant 0 : index
    %c0_6 = arith.constant 0 : index
    %11 = vector.load %arg4[%c0_5, %c0_6] : memref<50x128xf32, #tpu.memory_space<vmem>>, vector<50x128xf32>
    tpu.vector_store %arg4[%c0_5, %c0_6], %10 {strides = array<i32>} : memref<50x128xf32, #tpu.memory_space<vmem>>, vector<50x128xf32>,
    return
  }
  func.func @transform_0(%arg0: i32) -> (i32, i32) {
    %c0_i32 = arith.constant 0 : i32
    %c0_i32_0 = arith.constant 0 : i32
    return %arg0, %c0_i32 : i32, i32
  }
  func.func @transform_1(%arg0: i32) -> (i32, i32) {
    %c0_i32 = arith.constant 0 : i32
    %c0_i32_0 = arith.constant 0 : i32
    %c0_i32_1 = arith.constant 0 : i32
    return %c0_i32, %c0_i32_0 : i32, i32
  }
  func.func @transform_2(%arg0: i32) -> (i32, i32) {
    %c0_i32 = arith.constant 0 : i32
    %c0_i32_0 = arith.constant 0 : i32
    %c0_i32_1 = arith.constant 0 : i32
    return %c0_i32, %c0_i32_0 : i32, i32
  }
  func.func @transform_3(%arg0: i32) -> (i32, i32) {
    %c0_i32 = arith.constant 0 : i32
    %c0_i32_0 = arith.constant 0 : i32
    return %arg0, %c0_i32 : i32, i32
  }
}

</mosaic_0001>

<bundles_post_ra>
// kernel: discriminator_forward.5
= control target key start
LH: loop header
LB: loop body
LE: loop exit
PB: predicated region body
PF: predicated region fallthrough
CT: control target
= control target key end

     0   :  { %v505_v0 = vmov 0.0|0.0   ;;  %vm506_vm0 = vmmov 0   ;;  %v507_v6 = vmov 0.0   ;;  %vm48_vm1 = vcmask 523264   ;;  %s790_s1 = inlined_call_operand.vmem [shape: f32[64,128], index: 1, kind: input, shape index: {}]   ;;  %s791_s0 = inlined_call_operand.vmem [shape: f32[162,64], index: 0, kind: input, shape index: {}]   ;;  %s792_s2 = inlined_call_operand.vmem [shape: f32[2,128], index: 2, kind: input, shape index: {}]   ;;  %s793_s3 = inlined_call_operand.vmem [shape: f32[162,128], index: 3, kind: output, shape index: {}]  }
   0x1   :  { %482 = vmatprep.subr.bf16.mxu0 %v505_v0  ;;  %v35_v1 = vld [vmem:[%s790_s1] sm:$0xff]  ;;  %v36_v2 = vld [vmem:[%s790_s1 + $0x8] sm:$0xff]  ;;  %494 = vmatprep.subr.bf16.mxu1 %v505_v0  ;;  %v37_v3 = vld [vmem:[%s790_s1 + $0x10] sm:$0xff]  ;;  %v44_v35 = vlaneseq }
   0x2   :  { %v483_v4 = vpack.c.bf16 %v36_v2, %v35_v1  ;;  %v38_v5 = vld [vmem:[%s790_s1 + $0x18] sm:$0xff]  ;;  %419 = vmatprep.mubr.msk.f32.mxu0 %vm506_vm0, %v507_v6  ;;  %452 = vmatprep.mubr.msk.f32.mxu1 %vm506_vm0, %v507_v6  ;;  %v39_v8 = vld [vmem:[%s790_s1 + $0x20] sm:$0xff]  ;;  %v40_v9 = vld [vmem:[%s790_s1 + $0x28] sm:$0xff] }
   0x3   :  { %v486_v7 = vpack.c.bf16 %v38_v5, %v37_v3  ;;  %v489_v10 = vpack.c.bf16 %v40_v9, %v39_v8  ;;  %v41_v11 = vld [vmem:[%s790_s1 + $0x30] sm:$0xff]  ;;  %v42_v12 = vld [vmem:[%s790_s1 + $0x38] sm:$0xff]  ;;  %v14_v14 = vld [vmem:[%s791_s0] sm:$0xff]  ;;  %v45_v36 = vshrl.u32 %v44_v35, 7 }
   0x4   :  { %484 = vmatpush3.bf16.msra.mxu0 %v483_v4  ;;  %498 = vmatpush3.bf16.msra.mxu1 %v483_v4  ;;  %v492_v13 = vpack.c.bf16 %v42_v12, %v41_v11  ;;  %v25_v15 = vld [vmem:[%s791_s0 + $0x58] sm:$0xff]  ;;  %v15_v16 = vld [vmem:[%s791_s0 + $0x8] sm:$0xff]  ;;  %v26_v17 = vld [vmem:[%s791_s0 + $0x60] sm:$0xff] }
   0x5   :  { %485 = vmatprep.subr.bf16.mxu0 %v505_v0  ;;  %495 = vmatprep.subr.bf16.mxu1 %v505_v0  ;;  %v16_v18 = vld [vmem:[%s791_s0 + $0x10] sm:$0xff]  ;;  %v27_v19 = vld [vmem:[%s791_s0 + $0x68] sm:$0xff]  ;;  %v17_v20 = vld [vmem:[%s791_s0 + $0x18] sm:$0xff]  ;;  %v46_v37 = vsub.s32 0, %v45_v36  ;;  %v284_v39 = vsub.s32 1, %v45_v36 }
   0x6   :  { %v28_v21 = vld [vmem:[%s791_s0 + $0x70] sm:$0xff]  ;;  %v18_v22 = vld [vmem:[%s791_s0 + $0x20] sm:$0xff]  ;;  %v29_v23 = vld [vmem:[%s791_s0 + $0x78] sm:$0xff] }
   0x7   :  { %v19_v24 = vld [vmem:[%s791_s0 + $0x28] sm:$0xff]  ;;  %v30_v25 = vld [vmem:[%s791_s0 + $0x80] sm:$0xff]  ;;  %v20_v26 = vld [vmem:[%s791_s0 + $0x30] sm:$0xff] }
   0x8   :  { %487 = vmatpush3.bf16.msra.mxu0 %v486_v7  ;;  %499 = vmatpush3.bf16.msra.mxu1 %v486_v7  ;;  %v31_v27 = vld [vmem:[%s791_s0 + $0x88] sm:$0xff]  ;;  %v21_v28 = vld [vmem:[%s791_s0 + $0x38] sm:$0xff]  ;;  %v32_v29 = vld [vmem:[%s791_s0 + $0x90] sm:$0xff] }
   0x9   :  { %488 = vmatprep.subr.bf16.mxu0 %v505_v0  ;;  %496 = vmatprep.subr.bf16.mxu1 %v505_v0  ;;  %v22_v30 = vld [vmem:[%s791_s0 + $0x40] sm:$0xff]  ;;  %v33_v31 = vld [vmem:[%s791_s0 + $0x98] sm:$0xff]  ;;  %v23_v32 = vld [vmem:[%s791_s0 + $0x48] sm:$0xff] }
   0xa   :  { %v34_v33 = vld [vmem:[%s791_s0 + $0xa0] sm:$0x3]  ;;  %v24_v34 = vld [vmem:[%s791_s0 + $0x50] sm:$0xff] }
   0xb   :  { %v43_v38 = vld [vmem:[%s792_s2] sm:$0x3] }
   0xc   :  { %490 = vmatpush3.bf16.msra.mxu0 %v489_v10  ;;  %500 = vmatpush3.bf16.msra.mxu1 %v489_v10  ;;  %v681_v40 = vrot.slane %v43_v38, %v46_v37  ;;  %v683_v41 = vrot.slane %v43_v38, %v284_v39 }
   0xd   :  { %491 = vmatprep.subr.bf16.mxu0 %v505_v0  ;;  %497 = vmatprep.subr.bf16.mxu1 %v505_v0 }
  0x10   :  { %493 = vmatpush3.bf16.msra.mxu0 %v492_v13  ;;  %501 = vmatpush3.bf16.msra.mxu1 %v492_v13 }
  0x13   :  { %420 = vmatmul.mubr.msk.f32.vlgmr.msra.gmra.mrb[0].mxu0 %vm48_vm1, %v14_v14  ;;  %453 = vmatmul.mubr.msk.f32.vlgmr.msra.gmra.mrb[0].mxu1 %vm48_vm1, %v25_v15 }
  0x14   :  { %422 = vmatprep.mubr.msk.f32.mxu0 %vm506_vm0, %v507_v6  ;;  %455 = vmatprep.mubr.msk.f32.mxu1 %vm506_vm0, %v507_v6 }
  0x17   :  { %423 = vmatmul.mubr.msk.f32.gmra.mrb[2].mxu0 %vm48_vm1, %v15_v16  ;;  %456 = vmatmul.mubr.msk.f32.gmra.mrb[2].mxu1 %vm48_vm1, %v26_v17 }
  0x18   :  { %425 = vmatprep.mubr.msk.f32.mxu0 %vm506_vm0, %v507_v6  ;;  %458 = vmatprep.mubr.msk.f32.mxu1 %vm506_vm0, %v507_v6 }
  0x1b   :  { %426 = vmatmul.mubr.msk.f32.gmra.mrb[4].mxu0 %vm48_vm1, %v16_v18  ;;  %459 = vmatmul.mubr.msk.f32.gmra.mrb[4].mxu1 %vm48_vm1, %v27_v19 }
  0x1c   :  { %428 = vmatprep.mubr.msk.f32.mxu0 %vm506_vm0, %v507_v6  ;;  %461 = vmatprep.mubr.msk.f32.mxu1 %vm506_vm0, %v507_v6 }
  0x1f   :  { %429 = vmatmul.mubr.msk.f32.gmra.mrb[6].mxu0 %vm48_vm1, %v17_v20  ;;  %462 = vmatmul.mubr.msk.f32.gmra.mrb[6].mxu1 %vm48_vm1, %v28_v21 }
  0x20   :  { %431 = vmatprep.mubr.msk.f32.mxu0 %vm506_vm0, %v507_v6  ;;  %464 = vmatprep.mubr.msk.f32.mxu1 %vm506_vm0, %v507_v6 }
  0x23   :  { %432 = vmatmul.mubr.msk.f32.gmra.mrb[8].mxu0 %vm48_vm1, %v18_v22  ;;  %465 = vmatmul.mubr.msk.f32.gmra.mrb[8].mxu1 %vm48_vm1, %v29_v23 }
  0x24   :  { %434 = vmatprep.mubr.msk.f32.mxu0 %vm506_vm0, %v507_v6  ;;  %467 = vmatprep.mubr.msk.f32.mxu1 %vm506_vm0, %v507_v6 }
  0x27   :  { %435 = vmatmul.mubr.msk.f32.gmra.mrb[10].mxu0 %vm48_vm1, %v19_v24  ;;  %468 = vmatmul.mubr.msk.f32.gmra.mrb[10].mxu1 %vm48_vm1, %v30_v25 }
  0x28   :  { %437 = vmatprep.mubr.msk.f32.mxu0 %vm506_vm0, %v507_v6  ;;  %470 = vmatprep.mubr.msk.f32.mxu1 %vm506_vm0, %v507_v6 }
  0x2b   :  { %438 = vmatmul.mubr.msk.f32.gmra.mrb[12].mxu0 %vm48_vm1, %v20_v26  ;;  %471 = vmatmul.mubr.msk.f32.gmra.mrb[12].mxu1 %vm48_vm1, %v31_v27 }
  0x2c   :  { %440 = vmatprep.mubr.msk.f32.mxu0 %vm506_vm0, %v507_v6  ;;  %473 = vmatprep.mubr.msk.f32.mxu1 %vm506_vm0, %v507_v6 }
  0x2f   :  { %441 = vmatmul.mubr.msk.f32.gmra.mrb[14].mxu0 %vm48_vm1, %v21_v28  ;;  %474 = vmatmul.mubr.msk.f32.gmra.mrb[14].mxu1 %vm48_vm1, %v32_v29 }
  0x30   :  { %443 = vmatprep.mubr.msk.f32.mxu0 %vm506_vm0, %v507_v6  ;;  %476 = vmatprep.mubr.msk.f32.mxu1 %vm506_vm0, %v507_v6 }
  0x33   :  { %444 = vmatmul.mubr.msk.f32.gmra.mrb[16].mxu0 %vm48_vm1, %v22_v30  ;;  %477 = vmatmul.mubr.msk.f32.gmra.mrb[16].mxu1 %vm48_vm1, %v33_v31 }
  0x34   :  { %446 = vmatprep.mubr.msk.f32.mxu0 %vm506_vm0, %v507_v6  ;;  %479 = vmatprep.mubr.msk.f32.mxu1 %vm506_vm0, %v507_v6 }
  0x37   :  { %447 = vmatmul.mubr.msk.f32.gmra.mrb[18].mxu0 %vm48_vm1, %v23_v32  ;;  %480 = vmatmul.mubr.msk.f32.gmra.mrb[18].mxu1 %vm48_vm1, %v34_v33 }
  0x38   :  { %449 = vmatprep.mubr.msk.f32.mxu0 %vm506_vm0, %v507_v6 }
  0x3b   :  { %450 = vmatmul.mubr.msk.f32.gmra.mrb[20].mxu0 %vm48_vm1, %v24_v34 }
  0xe6   :  { %v178_v42 = vpop.f32.mrb[0].mxu0  ;;  %v233_v43 = vpop.f32.mrb[0].mxu1 }
  0xe7   :  { %v179_v44 = vadd.f32 %v178_v42, %v681_v40  ;;  %v421_v45 = vpop.f32.mrb[1].mxu0  ;;  %v234_v46 = vadd.f32 %v233_v43, %v681_v40  ;;  %v454_v47 = vpop.f32.mrb[1].mxu1 }
  0xe9   :  { %v286_v48 = vmul.f32 %v683_v41, %v179_v44  ;;  %v297_v49 = vmul.f32 %v683_v41, %v234_v46 }
  0xea   :  { %v183_v50 = vpop.f32.mrb[2].mxu0  ;;  %v238_v51 = vpop.f32.mrb[2].mxu1 }
  0xeb   :  { %v307_v52 = vmax.f32 %v179_v44, %v286_v48  ;;  %v318_v53 = vmax.f32 %v234_v46, %v297_v49  ;;  %v184_v54 = vadd.f32 %v183_v50, %v681_v40  ;;  %v424_v55 = vpop.f32.mrb[3].mxu0  ;;  %v239_v56 = vadd.f32 %v238_v51, %v681_v40  ;;  %v457_v57 = vpop.f32.mrb[3].mxu1 }
  0xed   :  { %328 = vst [vmem:[%s793_s3] sm:$0xff] %v307_v52  ;;  %339 = vst [vmem:[%s793_s3 + $0x58] sm:$0xff] %v318_v53  ;;  %v287_v58 = vmul.f32 %v683_v41, %v184_v54  ;;  %v298_v59 = vmul.f32 %v683_v41, %v239_v56 }
  0xee   :  { %v188_v60 = vpop.f32.mrb[4].mxu0  ;;  %v243_v61 = vpop.f32.mrb[4].mxu1 }
  0xef   :  { %v308_v62 = vmax.f32 %v184_v54, %v287_v58  ;;  %v319_v63 = vmax.f32 %v239_v56, %v298_v59  ;;  %v189_v0 = vadd.f32 %v188_v60, %v681_v40  ;;  %v427_v1 = vpop.f32.mrb[5].mxu0  ;;  %v244_v2 = vadd.f32 %v243_v61, %v681_v40  ;;  %v460_v3 = vpop.f32.mrb[5].mxu1 }
  0xf1   :  { %329 = vst [vmem:[%s793_s3 + $0x8] sm:$0xff] %v308_v62  ;;  %340 = vst [vmem:[%s793_s3 + $0x60] sm:$0xff] %v319_v63  ;;  %v288_v4 = vmul.f32 %v683_v41, %v189_v0  ;;  %v299_v5 = vmul.f32 %v683_v41, %v244_v2 }
  0xf2   :  { %v193_v6 = vpop.f32.mrb[6].mxu0  ;;  %v248_v7 = vpop.f32.mrb[6].mxu1 }
  0xf3   :  { %v309_v8 = vmax.f32 %v189_v0, %v288_v4  ;;  %v320_v9 = vmax.f32 %v244_v2, %v299_v5  ;;  %v194_v10 = vadd.f32 %v193_v6, %v681_v40  ;;  %v430_v11 = vpop.f32.mrb[7].mxu0  ;;  %v249_v12 = vadd.f32 %v248_v7, %v681_v40  ;;  %v463_v13 = vpop.f32.mrb[7].mxu1 }
  0xf5   :  { %330 = vst [vmem:[%s793_s3 + $0x10] sm:$0xff] %v309_v8  ;;  %341 = vst [vmem:[%s793_s3 + $0x68] sm:$0xff] %v320_v9  ;;  %v289_v14 = vmul.f32 %v683_v41, %v194_v10  ;;  %v300_v15 = vmul.f32 %v683_v41, %v249_v12 }
  0xf6   :  { %v198_v16 = vpop.f32.mrb[8].mxu0  ;;  %v253_v17 = vpop.f32.mrb[8].mxu1 }
  0xf7   :  { %v310_v18 = vmax.f32 %v194_v10, %v289_v14  ;;  %v321_v19 = vmax.f32 %v249_v12, %v300_v15  ;;  %v199_v20 = vadd.f32 %v198_v16, %v681_v40  ;;  %v433_v21 = vpop.f32.mrb[9].mxu0  ;;  %v254_v22 = vadd.f32 %v253_v17, %v681_v40  ;;  %v466_v23 = vpop.f32.mrb[9].mxu1 }
  0xf9   :  { %331 = vst [vmem:[%s793_s3 + $0x18] sm:$0xff] %v310_v18  ;;  %342 = vst [vmem:[%s793_s3 + $0x70] sm:$0xff] %v321_v19  ;;  %v290_v24 = vmul.f32 %v683_v41, %v199_v20  ;;  %v301_v25 = vmul.f32 %v683_v41, %v254_v22 }
  0xfa   :  { %v203_v26 = vpop.f32.mrb[10].mxu0  ;;  %v258_v27 = vpop.f32.mrb[10].mxu1 }
  0xfb   :  { %v311_v28 = vmax.f32 %v199_v20, %v290_v24  ;;  %v322_v29 = vmax.f32 %v254_v22, %v301_v25  ;;  %v204_v30 = vadd.f32 %v203_v26, %v681_v40  ;;  %v436_v31 = vpop.f32.mrb[11].mxu0  ;;  %v259_v32 = vadd.f32 %v258_v27, %v681_v40  ;;  %v469_v33 = vpop.f32.mrb[11].mxu1 }
  0xfd   :  { %332 = vst [vmem:[%s793_s3 + $0x20] sm:$0xff] %v311_v28  ;;  %343 = vst [vmem:[%s793_s3 + $0x78] sm:$0xff] %v322_v29  ;;  %v291_v34 = vmul.f32 %v683_v41, %v204_v30  ;;  %v302_v35 = vmul.f32 %v683_v41, %v259_v32 }
  0xfe   :  { %v208_v36 = vpop.f32.mrb[12].mxu0  ;;  %v263_v37 = vpop.f32.mrb[12].mxu1 }
  0xff   :  { %v312_v38 = vmax.f32 %v204_v30, %v291_v34  ;;  %v323_v39 = vmax.f32 %v259_v32, %v302_v35  ;;  %v209_v42 = vadd.f32 %v208_v36, %v681_v40  ;;  %v439_v43 = vpop.f32.mrb[13].mxu0  ;;  %v264_v44 = vadd.f32 %v263_v37, %v681_v40  ;;  %v472_v45 = vpop.f32.mrb[13].mxu1 }
 0x101   :  { %333 = vst [vmem:[%s793_s3 + $0x28] sm:$0xff] %v312_v38  ;;  %344 = vst [vmem:[%s793_s3 + $0x80] sm:$0xff] %v323_v39  ;;  %v292_v46 = vmul.f32 %v683_v41, %v209_v42  ;;  %v303_v47 = vmul.f32 %v683_v41, %v264_v44 }
 0x102   :  { %v213_v48 = vpop.f32.mrb[14].mxu0  ;;  %v268_v49 = vpop.f32.mrb[14].mxu1 }
 0x103   :  { %v313_v50 = vmax.f32 %v209_v42, %v292_v46  ;;  %v324_v51 = vmax.f32 %v264_v44, %v303_v47  ;;  %v214_v52 = vadd.f32 %v213_v48, %v681_v40  ;;  %v442_v53 = vpop.f32.mrb[15].mxu0  ;;  %v269_v54 = vadd.f32 %v268_v49, %v681_v40  ;;  %v475_v55 = vpop.f32.mrb[15].mxu1 }
 0x105   :  { %334 = vst [vmem:[%s793_s3 + $0x30] sm:$0xff] %v313_v50  ;;  %345 = vst [vmem:[%s793_s3 + $0x88] sm:$0xff] %v324_v51  ;;  %v293_v56 = vmul.f32 %v683_v41, %v214_v52  ;;  %v304_v57 = vmul.f32 %v683_v41, %v269_v54 }
 0x106   :  { %v218_v58 = vpop.f32.mrb[16].mxu0  ;;  %v273_v59 = vpop.f32.mrb[16].mxu1 }
 0x107   :  { %v314_v60 = vmax.f32 %v214_v52, %v293_v56  ;;  %v325_v61 = vmax.f32 %v269_v54, %v304_v57  ;;  %v219_v62 = vadd.f32 %v218_v58, %v681_v40  ;;  %v445_v63 = vpop.f32.mrb[17].mxu0  ;;  %v274_v0 = vadd.f32 %v273_v59, %v681_v40  ;;  %v478_v1 = vpop.f32.mrb[17].mxu1 }
 0x109   :  { %335 = vst [vmem:[%s793_s3 + $0x38] sm:$0xff] %v314_v60  ;;  %346 = vst [vmem:[%s793_s3 + $0x90] sm:$0xff] %v325_v61  ;;  %v294_v2 = vmul.f32 %v683_v41, %v219_v62  ;;  %v305_v3 = vmul.f32 %v683_v41, %v274_v0 }
 0x10a   :  { %v223_v4 = vpop.f32.mrb[18].mxu0  ;;  %v278_v5 = vpop.f32.mrb[18].mxu1 }
 0x10b   :  { %v315_v6 = vmax.f32 %v219_v62, %v294_v2  ;;  %v326_v7 = vmax.f32 %v274_v0, %v305_v3  ;;  %v224_v8 = vadd.f32 %v223_v4, %v681_v40  ;;  %v448_v9 = vpop.f32.mrb[19].mxu0  ;;  %v279_v10 = vadd.f32 %v278_v5, %v681_v40  ;;  %v481_v11 = vpop.f32.mrb[19].mxu1 }
 0x10d   :  { %336 = vst [vmem:[%s793_s3 + $0x40] sm:$0xff] %v315_v6  ;;  %347 = vst [vmem:[%s793_s3 + $0x98] sm:$0xff] %v326_v7  ;;  %v295_v12 = vmul.f32 %v683_v41, %v224_v8  ;;  %v306_v13 = vmul.f32 %v683_v41, %v279_v10 }
 0x10e   :  { %v228_v14 = vpop.f32.mrb[20].mxu0 }
 0x10f   :  { %v316_v15 = vmax.f32 %v224_v8, %v295_v12  ;;  %v327_v16 = vmax.f32 %v279_v10, %v306_v13  ;;  %v229_v17 = vadd.f32 %v228_v14, %v681_v40  ;;  %v451_v18 = vpop.f32.mrb[21].mxu0 }
 0x111   :  { %337 = vst [vmem:[%s793_s3 + $0x48] sm:$0xff] %v316_v15  ;;  %348 = vst [vmem:[%s793_s3 + $0xa0] sm:$0x3] %v327_v16  ;;  %v296_v19 = vmul.f32 %v683_v41, %v229_v17 }
 0x113   :  { %v317_v20 = vmax.f32 %v229_v17, %v296_v19 }
 0x115   :  { %338 = vst [vmem:[%s793_s3 + $0x50] sm:$0xff] %v317_v20 }

// kernel: discriminator_forward.6
= control target key start
LH: loop header
LB: loop body
LE: loop exit
PB: predicated region body
PF: predicated region fallthrough
CT: control target
= control target key end

     0   :  { %v290_v0 = vmov 0.0|0.0   ;;  %vm291_vm0 = vmmov 0   ;;  %v292_v6 = vmov 0.0   ;;  %v38_v33 = vlaneseq  ;;  %s420_s1 = inlined_call_operand.vmem [shape: f32[128,128], index: 1, kind: input, shape index: {}]   ;;  %s421_s0 = inlined_call_operand.vmem [shape: f32[50,128], index: 0, kind: input, shape index: {}]   ;;  %s422_s2 = inlined_call_operand.vmem [shape: f32[2,128], index: 2, kind: input, shape index: {}]   ;;  %s423_s3 = inlined_call_operand.vmem [shape: f32[50,128], index: 3, kind: output, shape index: {}]  }
   0x1   :  { %247 = vmatprep.subr.bf16.mxu0 %v290_v0  ;;  %v21_v1 = vld [vmem:[%s420_s1] sm:$0xff]  ;;  %v22_v2 = vld [vmem:[%s420_s1 + $0x8] sm:$0xff]  ;;  %271 = vmatprep.subr.bf16.mxu1 %v290_v0  ;;  %v23_v3 = vld [vmem:[%s420_s1 + $0x10] sm:$0xff] }
   0x2   :  { %v248_v4 = vpack.c.bf16 %v22_v2, %v21_v1  ;;  %v24_v5 = vld [vmem:[%s420_s1 + $0x18] sm:$0xff]  ;;  %226 = vmatprep.mubr.msk.f32.mxu0 %vm291_vm0, %v292_v6  ;;  %238 = vmatprep.mubr.msk.f32.mxu1 %vm291_vm0, %v292_v6  ;;  %v25_v8 = vld [vmem:[%s420_s1 + $0x20] sm:$0xff]  ;;  %v26_v9 = vld [vmem:[%s420_s1 + $0x28] sm:$0xff]  ;;  %v39_v34 = vshrl.u32 %v38_v33, 7 }
   0x3   :  { %v251_v7 = vpack.c.bf16 %v24_v5, %v23_v3  ;;  %v254_v10 = vpack.c.bf16 %v26_v9, %v25_v8  ;;  %v27_v11 = vld [vmem:[%s420_s1 + $0x30] sm:$0xff]  ;;  %v28_v12 = vld [vmem:[%s420_s1 + $0x38] sm:$0xff]  ;;  %v29_v14 = vld [vmem:[%s420_s1 + $0x40] sm:$0xff] }
   0x4   :  { %249 = vmatpush3.bf16.msra.mxu0 %v248_v4  ;;  %279 = vmatpush3.bf16.msra.mxu1 %v248_v4  ;;  %v257_v13 = vpack.c.bf16 %v28_v12, %v27_v11  ;;  %v30_v15 = vld [vmem:[%s420_s1 + $0x48] sm:$0xff]  ;;  %v31_v17 = vld [vmem:[%s420_s1 + $0x50] sm:$0xff]  ;;  %v32_v18 = vld [vmem:[%s420_s1 + $0x58] sm:$0xff]  ;;  %v40_v35 = vsub.s32 0, %v39_v34  ;;  %v144_v37 = vsub.s32 1, %v39_v34 }
   0x5   :  { %250 = vmatprep.subr.bf16.mxu0 %v290_v0  ;;  %272 = vmatprep.subr.bf16.mxu1 %v290_v0  ;;  %v260_v16 = vpack.c.bf16 %v30_v15, %v29_v14  ;;  %v263_v19 = vpack.c.bf16 %v32_v18, %v31_v17  ;;  %v33_v20 = vld [vmem:[%s420_s1 + $0x60] sm:$0xff]  ;;  %v34_v21 = vld [vmem:[%s420_s1 + $0x68] sm:$0xff]  ;;  %v35_v23 = vld [vmem:[%s420_s1 + $0x70] sm:$0xff] }
   0x6   :  { %v266_v22 = vpack.c.bf16 %v34_v21, %v33_v20  ;;  %v36_v24 = vld [vmem:[%s420_s1 + $0x78] sm:$0xff]  ;;  %v14_v26 = vld [vmem:[%s421_s0] sm:$0xff]  ;;  %v15_v28 = vld [vmem:[%s421_s0 + $0x8] sm:$0xff] }
   0x7   :  { %v269_v25 = vpack.c.bf16 %v36_v24, %v35_v23  ;;  %v18_v27 = vld [vmem:[%s421_s0 + $0x20] sm:$0xff]  ;;  %v19_v29 = vld [vmem:[%s421_s0 + $0x28] sm:$0xff]  ;;  %v16_v30 = vld [vmem:[%s421_s0 + $0x10] sm:$0xff] }
   0x8   :  { %252 = vmatpush3.bf16.msra.mxu0 %v251_v7  ;;  %280 = vmatpush3.bf16.msra.mxu1 %v251_v7  ;;  %v20_v31 = vld [vmem:[%s421_s0 + $0x30] sm:$0x3]  ;;  %v17_v32 = vld [vmem:[%s421_s0 + $0x18] sm:$0xff]  ;;  %v37_v36 = vld [vmem:[%s422_s2] sm:$0x3] }
   0x9   :  { %253 = vmatprep.subr.bf16.mxu0 %v290_v0  ;;  %273 = vmatprep.subr.bf16.mxu1 %v290_v0  ;;  %v41_v38 = vrot.slane %v37_v36, %v40_v35  ;;  %v145_v39 = vrot.slane %v37_v36, %v144_v37 }
   0xc   :  { %255 = vmatpush3.bf16.msra.mxu0 %v254_v10  ;;  %281 = vmatpush3.bf16.msra.mxu1 %v254_v10 }
   0xd   :  { %256 = vmatprep.subr.bf16.mxu0 %v290_v0  ;;  %274 = vmatprep.subr.bf16.mxu1 %v290_v0 }
  0x10   :  { %258 = vmatpush3.bf16.msra.mxu0 %v257_v13  ;;  %282 = vmatpush3.bf16.msra.mxu1 %v257_v13 }
  0x11   :  { %259 = vmatprep.subr.bf16.mxu0 %v290_v0  ;;  %275 = vmatprep.subr.bf16.mxu1 %v290_v0 }
  0x14   :  { %261 = vmatpush3.bf16.msra.mxu0 %v260_v16  ;;  %283 = vmatpush3.bf16.msra.mxu1 %v260_v16 }
  0x15   :  { %262 = vmatprep.subr.bf16.mxu0 %v290_v0  ;;  %276 = vmatprep.subr.bf16.mxu1 %v290_v0 }
  0x18   :  { %264 = vmatpush3.bf16.msra.mxu0 %v263_v19  ;;  %284 = vmatpush3.bf16.msra.mxu1 %v263_v19 }
  0x19   :  { %265 = vmatprep.subr.bf16.mxu0 %v290_v0  ;;  %277 = vmatprep.subr.bf16.mxu1 %v290_v0 }
  0x1c   :  { %267 = vmatpush3.bf16.msra.mxu0 %v266_v22  ;;  %285 = vmatpush3.bf16.msra.mxu1 %v266_v22 }
  0x1d   :  { %268 = vmatprep.subr.bf16.mxu0 %v290_v0  ;;  %278 = vmatprep.subr.bf16.mxu1 %v290_v0 }
  0x20   :  { %270 = vmatpush3.bf16.msra.mxu0 %v269_v25  ;;  %286 = vmatpush3.bf16.msra.mxu1 %v269_v25 }
  0x23   :  { %227 = vmatmul.mubr.f32.vlgmr.msra.gmra.mrb[0].mxu0 %v14_v26  ;;  %239 = vmatmul.mubr.f32.vlgmr.msra.gmra.mrb[0].mxu1 %v18_v27 }
  0x24   :  { %229 = vmatprep.mubr.msk.f32.mxu0 %vm291_vm0, %v292_v6  ;;  %241 = vmatprep.mubr.msk.f32.mxu1 %vm291_vm0, %v292_v6 }
  0x27   :  { %230 = vmatmul.mubr.f32.gmra.mrb[2].mxu0 %v15_v28  ;;  %242 = vmatmul.mubr.f32.gmra.mrb[2].mxu1 %v19_v29 }
  0x28   :  { %232 = vmatprep.mubr.msk.f32.mxu0 %vm291_vm0, %v292_v6  ;;  %244 = vmatprep.mubr.msk.f32.mxu1 %vm291_vm0, %v292_v6 }
  0x2b   :  { %233 = vmatmul.mubr.f32.gmra.mrb[4].mxu0 %v16_v30  ;;  %245 = vmatmul.mubr.f32.gmra.mrb[4].mxu1 %v20_v31 }
  0x2c   :  { %235 = vmatprep.mubr.msk.f32.mxu0 %vm291_vm0, %v292_v6 }
  0x2f   :  { %236 = vmatmul.mubr.f32.gmra.mrb[6].mxu0 %v17_v32 }
  0xf6   :  { %v108_v40 = vpop.f32.mrb[0].mxu0  ;;  %v128_v41 = vpop.f32.mrb[0].mxu1 }
  0xf7   :  { %v109_v42 = vadd.f32 %v108_v40, %v41_v38  ;;  %v228_v43 = vpop.f32.mrb[1].mxu0  ;;  %v129_v44 = vadd.f32 %v128_v41, %v41_v38  ;;  %v240_v45 = vpop.f32.mrb[1].mxu1 }
  0xf9   :  { %v146_v46 = vmul.f32 %v145_v39, %v109_v42  ;;  %v150_v47 = vmul.f32 %v145_v39, %v129_v44 }
  0xfa   :  { %v113_v48 = vpop.f32.mrb[2].mxu0  ;;  %v133_v49 = vpop.f32.mrb[2].mxu1 }
  0xfb   :  { %v153_v50 = vmax.f32 %v109_v42, %v146_v46  ;;  %v157_v51 = vmax.f32 %v129_v44, %v150_v47  ;;  %v114_v52 = vadd.f32 %v113_v48, %v41_v38  ;;  %v231_v53 = vpop.f32.mrb[3].mxu0  ;;  %v134_v54 = vadd.f32 %v133_v49, %v41_v38  ;;  %v243_v55 = vpop.f32.mrb[3].mxu1 }
  0xfd   :  { %160 = vst [vmem:[%s423_s3] sm:$0xff] %v153_v50  ;;  %164 = vst [vmem:[%s423_s3 + $0x20] sm:$0xff] %v157_v51  ;;  %v147_v56 = vmul.f32 %v145_v39, %v114_v52  ;;  %v151_v57 = vmul.f32 %v145_v39, %v134_v54 }
  0xfe   :  { %v118_v58 = vpop.f32.mrb[4].mxu0  ;;  %v138_v59 = vpop.f32.mrb[4].mxu1 }
  0xff   :  { %v154_v60 = vmax.f32 %v114_v52, %v147_v56  ;;  %v158_v61 = vmax.f32 %v134_v54, %v151_v57  ;;  %v119_v62 = vadd.f32 %v118_v58, %v41_v38  ;;  %v234_v63 = vpop.f32.mrb[5].mxu0  ;;  %v139_v0 = vadd.f32 %v138_v59, %v41_v38  ;;  %v246_v1 = vpop.f32.mrb[5].mxu1 }
 0x101   :  { %161 = vst [vmem:[%s423_s3 + $0x8] sm:$0xff] %v154_v60  ;;  %165 = vst [vmem:[%s423_s3 + $0x28] sm:$0xff] %v158_v61  ;;  %v148_v2 = vmul.f32 %v145_v39, %v119_v62  ;;  %v152_v3 = vmul.f32 %v145_v39, %v139_v0 }
 0x102   :  { %v123_v4 = vpop.f32.mrb[6].mxu0 }
 0x103   :  { %v155_v5 = vmax.f32 %v119_v62, %v148_v2  ;;  %v159_v6 = vmax.f32 %v139_v0, %v152_v3  ;;  %v124_v7 = vadd.f32 %v123_v4, %v41_v38  ;;  %v237_v8 = vpop.f32.mrb[7].mxu0 }
 0x105   :  { %162 = vst [vmem:[%s423_s3 + $0x10] sm:$0xff] %v155_v5  ;;  %166 = vst [vmem:[%s423_s3 + $0x30] sm:$0x3] %v159_v6  ;;  %v149_v9 = vmul.f32 %v145_v39, %v124_v7 }
 0x107   :  { %v156_v10 = vmax.f32 %v124_v7, %v149_v9 }
 0x109   :  { %163 = vst [vmem:[%s423_s3 + $0x18] sm:$0xff] %v156_v10 }

// kernel: discriminator_forward.7
= control target key start
LH: loop header
LB: loop body
LE: loop exit
PB: predicated region body
PF: predicated region fallthrough
CT: control target
= control target key end

     0   :  { %v53_v54 = vlaneseq  ;;  %s389_s1 = inlined_call_operand.vmem [shape: f32[256,128], index: 1, kind: input, shape index: {}]   ;;  %s390_s0 = inlined_call_operand.vmem [shape: f32[18,256], index: 0, kind: input, shape index: {}]   ;;  %s391_s2 = inlined_call_operand.vmem [shape: f32[2,128], index: 2, kind: input, shape index: {}]   ;;  %s392_s3 = inlined_call_operand.vmem [shape: f32[18,128], index: 3, kind: output, shape index: {}]  }
   0x1   :  { %v36_v0 = vld [vmem:[%s389_s1 + $0x80] sm:$0xff]  ;;  %v37_v1 = vld [vmem:[%s389_s1 + $0x88] sm:$0xff]  ;;  %v38_v5 = vld [vmem:[%s389_s1 + $0x90] sm:$0xff] }
   0x2   :  { %v20_v2 = vld [vmem:[%s389_s1] sm:$0xff]  ;;  %v195_v3 = vpack.c.bf16 %v37_v1, %v36_v0  ;;  %v21_v4 = vld [vmem:[%s389_s1 + $0x8] sm:$0xff]  ;;  %v39_v6 = vld [vmem:[%s389_s1 + $0x98] sm:$0xff]  ;;  %v54_v55 = vshrl.u32 %v53_v54, 7 }
   0x3   :  { %v197_v7 = vpack.c.bf16 %v21_v4, %v20_v2  ;;  %v199_v8 = vpack.c.bf16 %v39_v6, %v38_v5  ;;  %v22_v9 = vld [vmem:[%s389_s1 + $0x10] sm:$0xff]  ;;  %v23_v10 = vld [vmem:[%s389_s1 + $0x18] sm:$0xff]  ;;  %v40_v11 = vld [vmem:[%s389_s1 + $0xa0] sm:$0xff] }
   0x4   :  { %227 = vmatprep.subr.bf16.mxu1 %v195_v3  ;;  %196 = vmatprep.subr.bf16.mxu0 %v195_v3  ;;  %v41_v12 = vld [vmem:[%s389_s1 + $0xa8] sm:$0xff]  ;;  %v201_v13 = vpack.c.bf16 %v23_v10, %v22_v9  ;;  %v24_v15 = vld [vmem:[%s389_s1 + $0x20] sm:$0xff]  ;;  %v42_v17 = vld [vmem:[%s389_s1 + $0xb0] sm:$0xff]  ;;  %v55_v56 = vsub.s32 0, %v54_v55  ;;  %v139_v58 = vsub.s32 1, %v54_v55 }
   0x5   :  { %235 = vmatpush3.bf16.msra.mxu1 %v197_v7  ;;  %198 = vmatpush3.bf16.msra.mxu0 %v197_v7  ;;  %v203_v14 = vpack.c.bf16 %v41_v12, %v40_v11  ;;  %v25_v16 = vld [vmem:[%s389_s1 + $0x28] sm:$0xff]  ;;  %v43_v18 = vld [vmem:[%s389_s1 + $0xb8] sm:$0xff]  ;;  %v26_v21 = vld [vmem:[%s389_s1 + $0x30] sm:$0xff] }
   0x6   :  { %228 = vmatprep.subr.bf16.mxu1 %v199_v8  ;;  %200 = vmatprep.subr.bf16.mxu0 %v199_v8  ;;  %v205_v19 = vpack.c.bf16 %v25_v16, %v24_v15  ;;  %v207_v20 = vpack.c.bf16 %v43_v18, %v42_v17  ;;  %v27_v22 = vld [vmem:[%s389_s1 + $0x38] sm:$0xff]  ;;  %v44_v23 = vld [vmem:[%s389_s1 + $0xc0] sm:$0xff]  ;;  %v45_v24 = vld [vmem:[%s389_s1 + $0xc8] sm:$0xff] }
   0x7   :  { %v17_v25 = vld [vmem:[%s390_s0 + $0x18] sm:$0xff]  ;;  %v15_v26 = vld [vmem:[%s390_s0 + $0x8] sm:$0xff]  ;;  %v209_v27 = vpack.c.bf16 %v27_v22, %v26_v21  ;;  %v211_v28 = vpack.c.bf16 %v45_v24, %v44_v23  ;;  %v28_v29 = vld [vmem:[%s389_s1 + $0x40] sm:$0xff] }
   0x8   :  { %126 = vmatprep.mubr.f32.mxu1 %v17_v25  ;;  %v29_v30 = vld [vmem:[%s389_s1 + $0x48] sm:$0xff]  ;;  %v46_v31 = vld [vmem:[%s389_s1 + $0xd0] sm:$0xff]  ;;  %v47_v32 = vld [vmem:[%s389_s1 + $0xd8] sm:$0xff]  ;;  %121 = vmatprep.mubr.f32.mxu0 %v15_v26 }
   0x9   :  { %236 = vmatpush3.bf16.msra.mxu1 %v201_v13  ;;  %202 = vmatpush3.bf16.msra.mxu0 %v201_v13  ;;  %v213_v33 = vpack.c.bf16 %v29_v30, %v28_v29  ;;  %v215_v34 = vpack.c.bf16 %v47_v32, %v46_v31  ;;  %v30_v35 = vld [vmem:[%s389_s1 + $0x50] sm:$0xff]  ;;  %v31_v36 = vld [vmem:[%s389_s1 + $0x58] sm:$0xff]  ;;  %v48_v37 = vld [vmem:[%s389_s1 + $0xe0] sm:$0xff] }
   0xa   :  { %229 = vmatprep.subr.bf16.mxu1 %v203_v14  ;;  %204 = vmatprep.subr.bf16.mxu0 %v203_v14  ;;  %v49_v38 = vld [vmem:[%s389_s1 + $0xe8] sm:$0xff]  ;;  %v217_v39 = vpack.c.bf16 %v31_v36, %v30_v35  ;;  %v32_v41 = vld [vmem:[%s389_s1 + $0x60] sm:$0xff]  ;;  %v50_v43 = vld [vmem:[%s389_s1 + $0xf0] sm:$0xff] }
   0xb   :  { %v219_v40 = vpack.c.bf16 %v49_v38, %v48_v37  ;;  %v33_v42 = vld [vmem:[%s389_s1 + $0x68] sm:$0xff]  ;;  %v51_v44 = vld [vmem:[%s389_s1 + $0xf8] sm:$0xff]  ;;  %v34_v47 = vld [vmem:[%s389_s1 + $0x70] sm:$0xff] }
   0xc   :  { %v221_v45 = vpack.c.bf16 %v33_v42, %v32_v41  ;;  %v223_v46 = vpack.c.bf16 %v51_v44, %v50_v43  ;;  %v35_v48 = vld [vmem:[%s389_s1 + $0x78] sm:$0xff]  ;;  %v16_v50 = vld [vmem:[%s390_s0 + $0x10] sm:$0xff]  ;;  %v14_v51 = vld [vmem:[%s390_s0] sm:$0xff] }
   0xd   :  { %237 = vmatpush3.bf16.msra.mxu1 %v205_v19  ;;  %206 = vmatpush3.bf16.msra.mxu0 %v205_v19  ;;  %v225_v49 = vpack.c.bf16 %v35_v48, %v34_v47  ;;  %v19_v52 = vld [vmem:[%s390_s0 + $0x28] sm:$0x3]  ;;  %v18_v53 = vld [vmem:[%s390_s0 + $0x20] sm:$0x3] }
   0xe   :  { %230 = vmatprep.subr.bf16.mxu1 %v207_v20  ;;  %208 = vmatprep.subr.bf16.mxu0 %v207_v20  ;;  %v52_v57 = vld [vmem:[%s391_s2] sm:$0x3] }
   0xf   :  { %v56_v61 = vrot.slane %v52_v57, %v55_v56  ;;  %v140_v1 = vrot.slane %v52_v57, %v139_v58 }
  0x11   :  { %238 = vmatpush3.bf16.msra.mxu1 %v209_v27  ;;  %210 = vmatpush3.bf16.msra.mxu0 %v209_v27 }
  0x12   :  { %231 = vmatprep.subr.bf16.mxu1 %v211_v28  ;;  %212 = vmatprep.subr.bf16.mxu0 %v211_v28 }
  0x15   :  { %239 = vmatpush3.bf16.msra.mxu1 %v213_v33  ;;  %214 = vmatpush3.bf16.msra.mxu0 %v213_v33 }
  0x16   :  { %232 = vmatprep.subr.bf16.mxu1 %v215_v34  ;;  %216 = vmatprep.subr.bf16.mxu0 %v215_v34 }
  0x19   :  { %240 = vmatpush3.bf16.msra.mxu1 %v217_v39  ;;  %218 = vmatpush3.bf16.msra.mxu0 %v217_v39 }
  0x1a   :  { %233 = vmatprep.subr.bf16.mxu1 %v219_v40  ;;  %220 = vmatprep.subr.bf16.mxu0 %v219_v40 }
  0x1d   :  { %241 = vmatpush3.bf16.msra.mxu1 %v221_v45  ;;  %222 = vmatpush3.bf16.msra.mxu0 %v221_v45 }
  0x1e   :  { %234 = vmatprep.subr.bf16.mxu1 %v223_v46  ;;  %224 = vmatprep.subr.bf16.mxu0 %v223_v46 }
  0x21   :  { %242 = vmatpush3.bf16.msra.mxu1 %v225_v49  ;;  %226 = vmatpush3.bf16.msra.mxu0 %v225_v49 }
  0x24   :  { %127 = vmatmul.mubr.f32.vlgmr.msra.gmra.mrb[0].mxu1 %v16_v50  ;;  %122 = vmatmul.mubr.f32.vlgmr.msra.gmra.mrb[0].mxu0 %v14_v51 }
  0x25   :  { %131 = vmatprep.mubr.f32.mxu1 %v19_v52 }
  0x28   :  { %132 = vmatmul.mubr.f32.gmra.mrb[2].mxu1 %v18_v53 }
  0xf7   :  { %v189_v59 = vpop.f32.mrb[0].mxu1  ;;  %v186_v60 = vpop.f32.mrb[0].mxu0 }
  0xf8   :  { %v190_v62 = vpop.f32.mrb[1].mxu1  ;;  %v187_v63 = vpop.f32.mrb[1].mxu0 }
  0xf9   :  { %v191_v0 = vadd.f32 %v190_v62, %v189_v59  ;;  %v188_v2 = vadd.f32 %v187_v63, %v186_v60 }
  0xfb   :  { %v129_v3 = vadd.f32 %v191_v0, %v56_v61  ;;  %v124_v4 = vadd.f32 %v188_v2, %v56_v61  ;;  %v192_v5 = vpop.f32.mrb[2].mxu1 }
  0xfc   :  { %v193_v6 = vpop.f32.mrb[3].mxu1 }
  0xfd   :  { %v142_v7 = vmul.f32 %v140_v1, %v129_v3  ;;  %v141_v8 = vmul.f32 %v140_v1, %v124_v4  ;;  %v194_v9 = vadd.f32 %v193_v6, %v192_v5 }
  0xff   :  { %v145_v10 = vmax.f32 %v129_v3, %v142_v7  ;;  %v144_v11 = vmax.f32 %v124_v4, %v141_v8  ;;  %v134_v12 = vadd.f32 %v194_v9, %v56_v61 }
 0x101   :  { %148 = vst [vmem:[%s392_s3 + $0x8] sm:$0xff] %v145_v10  ;;  %147 = vst [vmem:[%s392_s3] sm:$0xff] %v144_v11  ;;  %v143_v13 = vmul.f32 %v140_v1, %v134_v12 }
 0x103   :  { %v146_v14 = vmax.f32 %v134_v12, %v143_v13 }
 0x105   :  { %149 = vst [vmem:[%s392_s3 + $0x10] sm:$0x3] %v146_v14 }

// kernel: discriminator_forward.8
= control target key start
LH: loop header
LB: loop body
LE: loop exit
PB: predicated region body
PF: predicated region fallthrough
CT: control target
= control target key end

     0   :  { %s716_s1 = inlined_call_operand.vmem [shape: f32[512,128], index: 1, kind: input, shape index: {}]   ;;  %s717_s0 = inlined_call_operand.vmem [shape: f32[32,512], index: 0, kind: input, shape index: {}]   ;;  %s718_s2 = inlined_call_operand.vmem [shape: f32[2,128], index: 2, kind: input, shape index: {}]   ;;  %s719_s3 = inlined_call_operand.vmem [shape: f32[32,128], index: 3, kind: output, shape index: {}]  }
   0x1   :  { %v46_v0 = vld [vmem:[%s716_s1 + $0x80] sm:$0xff]  ;;  %v47_v1 = vld [vmem:[%s716_s1 + $0x88] sm:$0xff]  ;;  %v48_v11 = vld [vmem:[%s716_s1 + $0x90] sm:$0xff] }
   0x2   :  { %v30_v2 = vld [vmem:[%s716_s1] sm:$0xff]  ;;  %v377_v3 = vpack.c.bf16 %v47_v1, %v46_v0  ;;  %v31_v4 = vld [vmem:[%s716_s1 + $0x8] sm:$0xff]  ;;  %v49_v13 = vld [vmem:[%s716_s1 + $0x98] sm:$0xff] }
   0x3   :  { %v78_v5 = vld [vmem:[%s716_s1 + $0x180] sm:$0xff]  ;;  %v79_v6 = vld [vmem:[%s716_s1 + $0x188] sm:$0xff]  ;;  %v379_v7 = vpack.c.bf16 %v31_v4, %v30_v2  ;;  %v32_v14 = vld [vmem:[%s716_s1 + $0x10] sm:$0xff]  ;;  %v381_v16 = vpack.c.bf16 %v49_v13, %v48_v11 }
   0x4   :  { %v409_v8 = vpack.c.bf16 %v79_v6, %v78_v5  ;;  %v62_v9 = vld [vmem:[%s716_s1 + $0x100] sm:$0xff]  ;;  %v63_v10 = vld [vmem:[%s716_s1 + $0x108] sm:$0xff]  ;;  %378 = vmatprep.subr.bf16.mxu0 %v377_v3  ;;  %v33_v15 = vld [vmem:[%s716_s1 + $0x18] sm:$0xff] }
   0x5   :  { %v411_v12 = vpack.c.bf16 %v63_v10, %v62_v9  ;;  %380 = vmatpush3.bf16.msra.mxu0 %v379_v7  ;;  %v383_v17 = vpack.c.bf16 %v33_v15, %v32_v14  ;;  %v80_v18 = vld [vmem:[%s716_s1 + $0x190] sm:$0xff]  ;;  %v81_v19 = vld [vmem:[%s716_s1 + $0x198] sm:$0xff]  ;;  %v50_v23 = vld [vmem:[%s716_s1 + $0xa0] sm:$0xff] }
   0x6   :  { %410 = vmatprep.subr.bf16.mxu1 %v409_v8  ;;  %v64_v20 = vld [vmem:[%s716_s1 + $0x110] sm:$0xff]  ;;  %v413_v21 = vpack.c.bf16 %v81_v19, %v80_v18  ;;  %v65_v22 = vld [vmem:[%s716_s1 + $0x118] sm:$0xff]  ;;  %v51_v24 = vld [vmem:[%s716_s1 + $0xa8] sm:$0xff]  ;;  %382 = vmatprep.subr.bf16.mxu0 %v381_v16 }
   0x7   :  { %412 = vmatpush3.bf16.msra.mxu1 %v411_v12  ;;  %v415_v25 = vpack.c.bf16 %v65_v22, %v64_v20  ;;  %v385_v26 = vpack.c.bf16 %v51_v24, %v50_v23  ;;  %v34_v27 = vld [vmem:[%s716_s1 + $0x20] sm:$0xff]  ;;  %v35_v28 = vld [vmem:[%s716_s1 + $0x28] sm:$0xff]  ;;  %v52_v35 = vld [vmem:[%s716_s1 + $0xb0] sm:$0xff] }
   0x8   :  { %v82_v29 = vld [vmem:[%s716_s1 + $0x1a0] sm:$0xff]  ;;  %414 = vmatprep.subr.bf16.mxu1 %v413_v21  ;;  %v83_v30 = vld [vmem:[%s716_s1 + $0x1a8] sm:$0xff]  ;;  %v387_v33 = vpack.c.bf16 %v35_v28, %v34_v27  ;;  %v53_v36 = vld [vmem:[%s716_s1 + $0xb8] sm:$0xff] }
   0x9   :  { %v66_v31 = vld [vmem:[%s716_s1 + $0x120] sm:$0xff]  ;;  %v67_v32 = vld [vmem:[%s716_s1 + $0x128] sm:$0xff]  ;;  %384 = vmatpush3.bf16.msra.mxu0 %v383_v17  ;;  %v417_v34 = vpack.c.bf16 %v83_v30, %v82_v29  ;;  %v36_v37 = vld [vmem:[%s716_s1 + $0x30] sm:$0xff]  ;;  %v389_v39 = vpack.c.bf16 %v53_v36, %v52_v35 }
   0xa   :  { %386 = vmatprep.subr.bf16.mxu0 %v385_v26  ;;  %v419_v38 = vpack.c.bf16 %v67_v32, %v66_v31  ;;  %v37_v40 = vld [vmem:[%s716_s1 + $0x38] sm:$0xff]  ;;  %v84_v41 = vld [vmem:[%s716_s1 + $0x1b0] sm:$0xff]  ;;  %v54_v46 = vld [vmem:[%s716_s1 + $0xc0] sm:$0xff] }
   0xb   :  { %416 = vmatpush3.bf16.msra.mxu1 %v415_v25  ;;  %v85_v42 = vld [vmem:[%s716_s1 + $0x1b8] sm:$0xff]  ;;  %v68_v44 = vld [vmem:[%s716_s1 + $0x130] sm:$0xff]  ;;  %v55_v47 = vld [vmem:[%s716_s1 + $0xc8] sm:$0xff]  ;;  %v391_v48 = vpack.c.bf16 %v37_v40, %v36_v37 }
   0xc   :  { %418 = vmatprep.subr.bf16.mxu1 %v417_v34  ;;  %v421_v43 = vpack.c.bf16 %v85_v42, %v84_v41  ;;  %v69_v45 = vld [vmem:[%s716_s1 + $0x138] sm:$0xff]  ;;  %v86_v49 = vld [vmem:[%s716_s1 + $0x1c0] sm:$0xff]  ;;  %v87_v50 = vld [vmem:[%s716_s1 + $0x1c8] sm:$0xff]  ;;  %v393_v52 = vpack.c.bf16 %v55_v47, %v54_v46 }
   0xd   :  { %388 = vmatpush3.bf16.msra.mxu0 %v387_v33  ;;  %v423_v51 = vpack.c.bf16 %v69_v45, %v68_v44  ;;  %v38_v53 = vld [vmem:[%s716_s1 + $0x40] sm:$0xff]  ;;  %v39_v54 = vld [vmem:[%s716_s1 + $0x48] sm:$0xff]  ;;  %v425_v56 = vpack.c.bf16 %v87_v50, %v86_v49  ;;  %v56_v58 = vld [vmem:[%s716_s1 + $0xd0] sm:$0xff] }
   0xe   :  { %390 = vmatprep.subr.bf16.mxu0 %v389_v39  ;;  %v70_v55 = vld [vmem:[%s716_s1 + $0x140] sm:$0xff]  ;;  %v71_v57 = vld [vmem:[%s716_s1 + $0x148] sm:$0xff]  ;;  %v57_v59 = vld [vmem:[%s716_s1 + $0xd8] sm:$0xff]  ;;  %v395_v62 = vpack.c.bf16 %v39_v54, %v38_v53 }
   0xf   :  { %420 = vmatpush3.bf16.msra.mxu1 %v419_v38  ;;  %v88_v60 = vld [vmem:[%s716_s1 + $0x1d0] sm:$0xff]  ;;  %v89_v61 = vld [vmem:[%s716_s1 + $0x1d8] sm:$0xff]  ;;  %v427_v63 = vpack.c.bf16 %v71_v57, %v70_v55  ;;  %v397_v0 = vpack.c.bf16 %v57_v59, %v56_v58  ;;  %v58_v6 = vld [vmem:[%s716_s1 + $0xe0] sm:$0xff] }
  0x10   :  { %422 = vmatprep.subr.bf16.mxu1 %v421_v43  ;;  %v40_v1 = vld [vmem:[%s716_s1 + $0x50] sm:$0xff]  ;;  %v41_v2 = vld [vmem:[%s716_s1 + $0x58] sm:$0xff]  ;;  %v429_v4 = vpack.c.bf16 %v89_v61, %v88_v60  ;;  %v59_v7 = vld [vmem:[%s716_s1 + $0xe8] sm:$0xff] }
  0x11   :  { %392 = vmatpush3.bf16.msra.mxu0 %v391_v48  ;;  %v72_v3 = vld [vmem:[%s716_s1 + $0x150] sm:$0xff]  ;;  %v73_v5 = vld [vmem:[%s716_s1 + $0x158] sm:$0xff]  ;;  %v90_v8 = vld [vmem:[%s716_s1 + $0x1e0] sm:$0xff]  ;;  %v399_v10 = vpack.c.bf16 %v41_v2, %v40_v1  ;;  %v401_v14 = vpack.c.bf16 %v59_v7, %v58_v6  ;;  %v95_v48 = vlaneseq }
  0x12   :  { %394 = vmatprep.subr.bf16.mxu0 %v393_v52  ;;  %v91_v9 = vld [vmem:[%s716_s1 + $0x1e8] sm:$0xff]  ;;  %v42_v11 = vld [vmem:[%s716_s1 + $0x60] sm:$0xff]  ;;  %v431_v13 = vpack.c.bf16 %v73_v5, %v72_v3  ;;  %v60_v19 = vld [vmem:[%s716_s1 + $0xf0] sm:$0xff] }
  0x13   :  { %424 = vmatpush3.bf16.msra.mxu1 %v423_v51  ;;  %v43_v12 = vld [vmem:[%s716_s1 + $0x68] sm:$0xff]  ;;  %v74_v15 = vld [vmem:[%s716_s1 + $0x160] sm:$0xff]  ;;  %v433_v18 = vpack.c.bf16 %v91_v9, %v90_v8  ;;  %v61_v20 = vld [vmem:[%s716_s1 + $0xf8] sm:$0xff]  ;;  %v96_v49 = vshrl.u32 %v95_v48, 7 }
  0x14   :  { %426 = vmatprep.subr.bf16.mxu1 %v425_v56  ;;  %v75_v16 = vld [vmem:[%s716_s1 + $0x168] sm:$0xff]  ;;  %v17_v21 = vld [vmem:[%s717_s0 + $0x18] sm:$0xff]  ;;  %v92_v22 = vld [vmem:[%s716_s1 + $0x1f0] sm:$0xff]  ;;  %v403_v24 = vpack.c.bf16 %v43_v12, %v42_v11  ;;  %v405_v26 = vpack.c.bf16 %v61_v20, %v60_v19 }
  0x15   :  { %396 = vmatpush3.bf16.msra.mxu0 %v395_v62  ;;  %v15_v17 = vld [vmem:[%s717_s0 + $0x8] sm:$0xff]  ;;  %v93_v23 = vld [vmem:[%s716_s1 + $0x1f8] sm:$0xff]  ;;  %248 = vmatprep.mubr.f32.mxu1 %v17_v21  ;;  %v435_v25 = vpack.c.bf16 %v75_v16, %v74_v15  ;;  %v44_v27 = vld [vmem:[%s716_s1 + $0x70] sm:$0xff]  ;;  %v97_v50 = vsub.s32 0, %v96_v49  ;;  %v271_v54 = vsub.s32 1, %v96_v49 }
  0x16   :  { %398 = vmatprep.subr.bf16.mxu0 %v397_v0  ;;  %163 = vmatprep.mubr.f32.mxu0 %v15_v17  ;;  %v45_v28 = vld [vmem:[%s716_s1 + $0x78] sm:$0xff]  ;;  %v437_v29 = vpack.c.bf16 %v93_v23, %v92_v22  ;;  %v76_v30 = vld [vmem:[%s716_s1 + $0x170] sm:$0xff]  ;;  %v14_v34 = vld [vmem:[%s717_s0] sm:$0xff] }
  0x17   :  { %428 = vmatpush3.bf16.msra.mxu1 %v427_v63  ;;  %v77_v31 = vld [vmem:[%s716_s1 + $0x178] sm:$0xff]  ;;  %v407_v32 = vpack.c.bf16 %v45_v28, %v44_v27  ;;  %v16_v35 = vld [vmem:[%s717_s0 + $0x10] sm:$0xff]  ;;  %v19_v36 = vld [vmem:[%s717_s0 + $0x28] sm:$0xff] }
  0x18   :  { %430 = vmatprep.subr.bf16.mxu1 %v429_v4  ;;  %v439_v33 = vpack.c.bf16 %v77_v31, %v76_v30  ;;  %v21_v37 = vld [vmem:[%s717_s0 + $0x38] sm:$0xff]  ;;  %v18_v38 = vld [vmem:[%s717_s0 + $0x20] sm:$0xff]  ;;  %v20_v39 = vld [vmem:[%s717_s0 + $0x30] sm:$0xff] }
  0x19   :  { %400 = vmatpush3.bf16.msra.mxu0 %v399_v10  ;;  %v23_v40 = vld [vmem:[%s717_s0 + $0x48] sm:$0xff]  ;;  %v25_v41 = vld [vmem:[%s717_s0 + $0x58] sm:$0xff]  ;;  %v22_v42 = vld [vmem:[%s717_s0 + $0x40] sm:$0xff] }
  0x1a   :  { %402 = vmatprep.subr.bf16.mxu0 %v401_v14  ;;  %v24_v43 = vld [vmem:[%s717_s0 + $0x50] sm:$0xff]  ;;  %v27_v44 = vld [vmem:[%s717_s0 + $0x68] sm:$0xff]  ;;  %v29_v45 = vld [vmem:[%s717_s0 + $0x78] sm:$0xff] }
  0x1b   :  { %432 = vmatpush3.bf16.msra.mxu1 %v431_v13  ;;  %v26_v46 = vld [vmem:[%s717_s0 + $0x60] sm:$0xff]  ;;  %v28_v47 = vld [vmem:[%s717_s0 + $0x70] sm:$0xff] }
  0x1c   :  { %434 = vmatprep.subr.bf16.mxu1 %v433_v18  ;;  %v94_v51 = vld [vmem:[%s718_s2] sm:$0x3] }
  0x1d   :  { %404 = vmatpush3.bf16.msra.mxu0 %v403_v24  ;;  %v98_v53 = vrot.slane %v94_v51, %v97_v50  ;;  %v272_v61 = vrot.slane %v94_v51, %v271_v54 }
  0x1e   :  { %406 = vmatprep.subr.bf16.mxu0 %v405_v26 }
  0x1f   :  { %436 = vmatpush3.bf16.msra.mxu1 %v435_v25 }
  0x20   :  { %438 = vmatprep.subr.bf16.mxu1 %v437_v29 }
  0x21   :  { %408 = vmatpush3.bf16.msra.mxu0 %v407_v32 }
  0x23   :  { %440 = vmatpush3.bf16.msra.mxu1 %v439_v33 }
  0x24   :  { %164 = vmatmul.mubr.f32.vlgmr.msra.gmra.mrb[0].mxu0 %v14_v34 }
  0x25   :  { %168 = vmatprep.mubr.f32.mxu0 %v19_v36 }
  0x26   :  { %249 = vmatmul.mubr.f32.vlgmr.msra.gmra.mrb[0].mxu1 %v16_v35 }
  0x27   :  { %253 = vmatprep.mubr.f32.mxu1 %v21_v37 }
  0x28   :  { %169 = vmatmul.mubr.f32.gmra.mrb[2].mxu0 %v18_v38 }
  0x29   :  { %173 = vmatprep.mubr.f32.mxu0 %v23_v40 }
  0x2a   :  { %254 = vmatmul.mubr.f32.gmra.mrb[2].mxu1 %v20_v39 }
  0x2b   :  { %258 = vmatprep.mubr.f32.mxu1 %v25_v41 }
  0x2c   :  { %174 = vmatmul.mubr.f32.gmra.mrb[4].mxu0 %v22_v42 }
  0x2d   :  { %178 = vmatprep.mubr.f32.mxu0 %v27_v44 }
  0x2e   :  { %259 = vmatmul.mubr.f32.gmra.mrb[4].mxu1 %v24_v43 }
  0x2f   :  { %263 = vmatprep.mubr.f32.mxu1 %v29_v45 }
  0x30   :  { %179 = vmatmul.mubr.f32.gmra.mrb[6].mxu0 %v26_v46 }
  0x32   :  { %264 = vmatmul.mubr.f32.gmra.mrb[6].mxu1 %v28_v47 }
  0xf7   :  { %v321_v52 = vpop.f32.mrb[0].mxu0 }
  0xf8   :  { %v322_v55 = vpop.f32.mrb[1].mxu0 }
  0xf9   :  { %v365_v56 = vpop.f32.mrb[0].mxu1  ;;  %v323_v57 = vadd.f32 %v322_v55, %v321_v52 }
  0xfa   :  { %v366_v58 = vpop.f32.mrb[1].mxu1 }
  0xfb   :  { %v367_v59 = vadd.f32 %v366_v58, %v365_v56  ;;  %v166_v60 = vadd.f32 %v323_v57, %v98_v53  ;;  %v324_v62 = vpop.f32.mrb[2].mxu0 }
  0xfc   :  { %v325_v63 = vpop.f32.mrb[3].mxu0 }
  0xfd   :  { %v368_v0 = vpop.f32.mrb[2].mxu1  ;;  %v251_v1 = vadd.f32 %v367_v59, %v166_v60  ;;  %v326_v2 = vadd.f32 %v325_v63, %v324_v62 }
  0xfe   :  { %v369_v3 = vpop.f32.mrb[3].mxu1 }
  0xff   :  { %v370_v4 = vadd.f32 %v369_v3, %v368_v0  ;;  %v273_v5 = vmul.f32 %v272_v61, %v251_v1  ;;  %v171_v6 = vadd.f32 %v326_v2, %v98_v53  ;;  %v327_v7 = vpop.f32.mrb[4].mxu0 }
 0x100   :  { %v328_v8 = vpop.f32.mrb[5].mxu0 }
 0x101   :  { %v371_v9 = vpop.f32.mrb[4].mxu1  ;;  %v277_v10 = vmax.f32 %v251_v1, %v273_v5  ;;  %v256_v11 = vadd.f32 %v370_v4, %v171_v6  ;;  %v329_v12 = vadd.f32 %v328_v8, %v327_v7 }
 0x102   :  { %v372_v13 = vpop.f32.mrb[5].mxu1 }
 0x103   :  { %v373_v14 = vadd.f32 %v372_v13, %v371_v9  ;;  %281 = vst [vmem:[%s719_s3] sm:$0xff] %v277_v10  ;;  %v274_v15 = vmul.f32 %v272_v61, %v256_v11  ;;  %v176_v16 = vadd.f32 %v329_v12, %v98_v53  ;;  %v330_v17 = vpop.f32.mrb[6].mxu0 }
 0x104   :  { %v331_v18 = vpop.f32.mrb[7].mxu0 }
 0x105   :  { %v374_v19 = vpop.f32.mrb[6].mxu1  ;;  %v278_v20 = vmax.f32 %v256_v11, %v274_v15  ;;  %v261_v21 = vadd.f32 %v373_v14, %v176_v16  ;;  %v332_v22 = vadd.f32 %v331_v18, %v330_v17 }
 0x106   :  { %v375_v23 = vpop.f32.mrb[7].mxu1 }
 0x107   :  { %v376_v24 = vadd.f32 %v375_v23, %v374_v19  ;;  %282 = vst [vmem:[%s719_s3 + $0x8] sm:$0xff] %v278_v20  ;;  %v275_v25 = vmul.f32 %v272_v61, %v261_v21  ;;  %v181_v26 = vadd.f32 %v332_v22, %v98_v53 }
 0x109   :  { %v279_v27 = vmax.f32 %v261_v21, %v275_v25  ;;  %v266_v28 = vadd.f32 %v376_v24, %v181_v26 }
 0x10b   :  { %283 = vst [vmem:[%s719_s3 + $0x10] sm:$0xff] %v279_v27  ;;  %v276_v29 = vmul.f32 %v272_v61, %v266_v28 }
 0x10d   :  { %v280_v30 = vmax.f32 %v266_v28, %v276_v29 }
 0x10f   :  { %284 = vst [vmem:[%s719_s3 + $0x18] sm:$0xff] %v280_v30 }

// kernel: discriminator_forward.9
= control target key start
LH: loop header
LB: loop body
LE: loop exit
PB: predicated region body
PF: predicated region fallthrough
CT: control target
= control target key end

     0   :  { %s848_s1 = inlined_call_operand.vmem [shape: f32[512,128], index: 1, kind: input, shape index: {}]   ;;  %s849_s0 = inlined_call_operand.vmem [shape: f32[50,512], index: 0, kind: input, shape index: {}]   ;;  %s850_s2 = inlined_call_operand.vmem [shape: f32[2,128], index: 2, kind: input, shape index: {}]   ;;  %s851_s3 = inlined_call_operand.vmem [shape: f32[50,128], index: 3, kind: output, shape index: {}]  }
   0x1   :  { %v58_v0 = vld [vmem:[%s848_s1 + $0x80] sm:$0xff]  ;;  %v59_v1 = vld [vmem:[%s848_s1 + $0x88] sm:$0xff]  ;;  %v60_v11 = vld [vmem:[%s848_s1 + $0x90] sm:$0xff] }
   0x2   :  { %v42_v2 = vld [vmem:[%s848_s1] sm:$0xff]  ;;  %v446_v3 = vpack.c.bf16 %v59_v1, %v58_v0  ;;  %v43_v4 = vld [vmem:[%s848_s1 + $0x8] sm:$0xff]  ;;  %v61_v13 = vld [vmem:[%s848_s1 + $0x98] sm:$0xff] }
   0x3   :  { %v90_v5 = vld [vmem:[%s848_s1 + $0x180] sm:$0xff]  ;;  %v91_v6 = vld [vmem:[%s848_s1 + $0x188] sm:$0xff]  ;;  %v448_v7 = vpack.c.bf16 %v43_v4, %v42_v2  ;;  %v44_v14 = vld [vmem:[%s848_s1 + $0x10] sm:$0xff]  ;;  %v450_v16 = vpack.c.bf16 %v61_v13, %v60_v11 }
   0x4   :  { %v478_v8 = vpack.c.bf16 %v91_v6, %v90_v5  ;;  %v74_v9 = vld [vmem:[%s848_s1 + $0x100] sm:$0xff]  ;;  %v75_v10 = vld [vmem:[%s848_s1 + $0x108] sm:$0xff]  ;;  %447 = vmatprep.subr.bf16.mxu0 %v446_v3  ;;  %v45_v15 = vld [vmem:[%s848_s1 + $0x18] sm:$0xff] }
   0x5   :  { %v480_v12 = vpack.c.bf16 %v75_v10, %v74_v9  ;;  %449 = vmatpush3.bf16.msra.mxu0 %v448_v7  ;;  %v452_v17 = vpack.c.bf16 %v45_v15, %v44_v14  ;;  %v92_v18 = vld [vmem:[%s848_s1 + $0x190] sm:$0xff]  ;;  %v93_v19 = vld [vmem:[%s848_s1 + $0x198] sm:$0xff]  ;;  %v62_v23 = vld [vmem:[%s848_s1 + $0xa0] sm:$0xff] }
   0x6   :  { %479 = vmatprep.subr.bf16.mxu1 %v478_v8  ;;  %v76_v20 = vld [vmem:[%s848_s1 + $0x110] sm:$0xff]  ;;  %v482_v21 = vpack.c.bf16 %v93_v19, %v92_v18  ;;  %v77_v22 = vld [vmem:[%s848_s1 + $0x118] sm:$0xff]  ;;  %v63_v24 = vld [vmem:[%s848_s1 + $0xa8] sm:$0xff]  ;;  %451 = vmatprep.subr.bf16.mxu0 %v450_v16 }
   0x7   :  { %481 = vmatpush3.bf16.msra.mxu1 %v480_v12  ;;  %v484_v25 = vpack.c.bf16 %v77_v22, %v76_v20  ;;  %v454_v26 = vpack.c.bf16 %v63_v24, %v62_v23  ;;  %v46_v27 = vld [vmem:[%s848_s1 + $0x20] sm:$0xff]  ;;  %v47_v28 = vld [vmem:[%s848_s1 + $0x28] sm:$0xff]  ;;  %v64_v35 = vld [vmem:[%s848_s1 + $0xb0] sm:$0xff] }
   0x8   :  { %v94_v29 = vld [vmem:[%s848_s1 + $0x1a0] sm:$0xff]  ;;  %483 = vmatprep.subr.bf16.mxu1 %v482_v21  ;;  %v95_v30 = vld [vmem:[%s848_s1 + $0x1a8] sm:$0xff]  ;;  %v456_v33 = vpack.c.bf16 %v47_v28, %v46_v27  ;;  %v65_v36 = vld [vmem:[%s848_s1 + $0xb8] sm:$0xff] }
   0x9   :  { %v78_v31 = vld [vmem:[%s848_s1 + $0x120] sm:$0xff]  ;;  %v79_v32 = vld [vmem:[%s848_s1 + $0x128] sm:$0xff]  ;;  %453 = vmatpush3.bf16.msra.mxu0 %v452_v17  ;;  %v486_v34 = vpack.c.bf16 %v95_v30, %v94_v29  ;;  %v48_v37 = vld [vmem:[%s848_s1 + $0x30] sm:$0xff]  ;;  %v458_v39 = vpack.c.bf16 %v65_v36, %v64_v35 }
   0xa   :  { %455 = vmatprep.subr.bf16.mxu0 %v454_v26  ;;  %v488_v38 = vpack.c.bf16 %v79_v32, %v78_v31  ;;  %v49_v40 = vld [vmem:[%s848_s1 + $0x38] sm:$0xff]  ;;  %v96_v41 = vld [vmem:[%s848_s1 + $0x1b0] sm:$0xff]  ;;  %v66_v46 = vld [vmem:[%s848_s1 + $0xc0] sm:$0xff] }
   0xb   :  { %485 = vmatpush3.bf16.msra.mxu1 %v484_v25  ;;  %v97_v42 = vld [vmem:[%s848_s1 + $0x1b8] sm:$0xff]  ;;  %v80_v44 = vld [vmem:[%s848_s1 + $0x130] sm:$0xff]  ;;  %v67_v47 = vld [vmem:[%s848_s1 + $0xc8] sm:$0xff]  ;;  %v460_v48 = vpack.c.bf16 %v49_v40, %v48_v37 }
   0xc   :  { %487 = vmatprep.subr.bf16.mxu1 %v486_v34  ;;  %v490_v43 = vpack.c.bf16 %v97_v42, %v96_v41  ;;  %v81_v45 = vld [vmem:[%s848_s1 + $0x138] sm:$0xff]  ;;  %v98_v49 = vld [vmem:[%s848_s1 + $0x1c0] sm:$0xff]  ;;  %v99_v50 = vld [vmem:[%s848_s1 + $0x1c8] sm:$0xff]  ;;  %v462_v52 = vpack.c.bf16 %v67_v47, %v66_v46 }
   0xd   :  { %457 = vmatpush3.bf16.msra.mxu0 %v456_v33  ;;  %v492_v51 = vpack.c.bf16 %v81_v45, %v80_v44  ;;  %v50_v53 = vld [vmem:[%s848_s1 + $0x40] sm:$0xff]  ;;  %v51_v54 = vld [vmem:[%s848_s1 + $0x48] sm:$0xff]  ;;  %v494_v56 = vpack.c.bf16 %v99_v50, %v98_v49  ;;  %v68_v58 = vld [vmem:[%s848_s1 + $0xd0] sm:$0xff] }
   0xe   :  { %459 = vmatprep.subr.bf16.mxu0 %v458_v39  ;;  %v82_v55 = vld [vmem:[%s848_s1 + $0x140] sm:$0xff]  ;;  %v83_v57 = vld [vmem:[%s848_s1 + $0x148] sm:$0xff]  ;;  %v69_v59 = vld [vmem:[%s848_s1 + $0xd8] sm:$0xff]  ;;  %v464_v62 = vpack.c.bf16 %v51_v54, %v50_v53 }
   0xf   :  { %489 = vmatpush3.bf16.msra.mxu1 %v488_v38  ;;  %v100_v60 = vld [vmem:[%s848_s1 + $0x1d0] sm:$0xff]  ;;  %v101_v61 = vld [vmem:[%s848_s1 + $0x1d8] sm:$0xff]  ;;  %v496_v63 = vpack.c.bf16 %v83_v57, %v82_v55  ;;  %v466_v0 = vpack.c.bf16 %v69_v59, %v68_v58  ;;  %v70_v6 = vld [vmem:[%s848_s1 + $0xe0] sm:$0xff] }
  0x10   :  { %491 = vmatprep.subr.bf16.mxu1 %v490_v43  ;;  %v52_v1 = vld [vmem:[%s848_s1 + $0x50] sm:$0xff]  ;;  %v53_v2 = vld [vmem:[%s848_s1 + $0x58] sm:$0xff]  ;;  %v498_v4 = vpack.c.bf16 %v101_v61, %v100_v60  ;;  %v71_v7 = vld [vmem:[%s848_s1 + $0xe8] sm:$0xff]  ;;  %v107_v60 = vlaneseq }
  0x11   :  { %461 = vmatpush3.bf16.msra.mxu0 %v460_v48  ;;  %v84_v3 = vld [vmem:[%s848_s1 + $0x150] sm:$0xff]  ;;  %v85_v5 = vld [vmem:[%s848_s1 + $0x158] sm:$0xff]  ;;  %v102_v8 = vld [vmem:[%s848_s1 + $0x1e0] sm:$0xff]  ;;  %v468_v10 = vpack.c.bf16 %v53_v2, %v52_v1  ;;  %v470_v14 = vpack.c.bf16 %v71_v7, %v70_v6 }
  0x12   :  { %463 = vmatprep.subr.bf16.mxu0 %v462_v52  ;;  %v103_v9 = vld [vmem:[%s848_s1 + $0x1e8] sm:$0xff]  ;;  %v54_v11 = vld [vmem:[%s848_s1 + $0x60] sm:$0xff]  ;;  %v500_v13 = vpack.c.bf16 %v85_v5, %v84_v3  ;;  %v72_v19 = vld [vmem:[%s848_s1 + $0xf0] sm:$0xff]  ;;  %v108_v61 = vshrl.u32 %v107_v60, 7 }
  0x13   :  { %493 = vmatpush3.bf16.msra.mxu1 %v492_v51  ;;  %v55_v12 = vld [vmem:[%s848_s1 + $0x68] sm:$0xff]  ;;  %v86_v15 = vld [vmem:[%s848_s1 + $0x160] sm:$0xff]  ;;  %v502_v18 = vpack.c.bf16 %v103_v9, %v102_v8  ;;  %v73_v20 = vld [vmem:[%s848_s1 + $0xf8] sm:$0xff] }
  0x14   :  { %495 = vmatprep.subr.bf16.mxu1 %v494_v56  ;;  %v87_v16 = vld [vmem:[%s848_s1 + $0x168] sm:$0xff]  ;;  %v17_v21 = vld [vmem:[%s849_s0 + $0x18] sm:$0xff]  ;;  %v104_v22 = vld [vmem:[%s848_s1 + $0x1f0] sm:$0xff]  ;;  %v472_v24 = vpack.c.bf16 %v55_v12, %v54_v11  ;;  %v474_v26 = vpack.c.bf16 %v73_v20, %v72_v19  ;;  %v313_v2 = vsub.s32 1, %v108_v61 }
  0x15   :  { %465 = vmatpush3.bf16.msra.mxu0 %v464_v62  ;;  %v15_v17 = vld [vmem:[%s849_s0 + $0x8] sm:$0xff]  ;;  %v105_v23 = vld [vmem:[%s848_s1 + $0x1f8] sm:$0xff]  ;;  %275 = vmatprep.mubr.f32.mxu1 %v17_v21  ;;  %v504_v25 = vpack.c.bf16 %v87_v16, %v86_v15  ;;  %v56_v27 = vld [vmem:[%s848_s1 + $0x70] sm:$0xff]  ;;  %v109_v62 = vsub.s32 0, %v108_v61 }
  0x16   :  { %467 = vmatprep.subr.bf16.mxu0 %v466_v0  ;;  %175 = vmatprep.mubr.f32.mxu0 %v15_v17  ;;  %v57_v28 = vld [vmem:[%s848_s1 + $0x78] sm:$0xff]  ;;  %v506_v29 = vpack.c.bf16 %v105_v23, %v104_v22  ;;  %v88_v30 = vld [vmem:[%s848_s1 + $0x170] sm:$0xff]  ;;  %v14_v34 = vld [vmem:[%s849_s0] sm:$0xff] }
  0x17   :  { %497 = vmatpush3.bf16.msra.mxu1 %v496_v63  ;;  %v89_v31 = vld [vmem:[%s848_s1 + $0x178] sm:$0xff]  ;;  %v476_v32 = vpack.c.bf16 %v57_v28, %v56_v27  ;;  %v16_v35 = vld [vmem:[%s849_s0 + $0x10] sm:$0xff]  ;;  %v19_v36 = vld [vmem:[%s849_s0 + $0x28] sm:$0xff] }
  0x18   :  { %499 = vmatprep.subr.bf16.mxu1 %v498_v4  ;;  %v508_v33 = vpack.c.bf16 %v89_v31, %v88_v30  ;;  %v21_v37 = vld [vmem:[%s849_s0 + $0x38] sm:$0xff]  ;;  %v18_v38 = vld [vmem:[%s849_s0 + $0x20] sm:$0xff]  ;;  %v20_v39 = vld [vmem:[%s849_s0 + $0x30] sm:$0xff] }
  0x19   :  { %469 = vmatpush3.bf16.msra.mxu0 %v468_v10  ;;  %v23_v40 = vld [vmem:[%s849_s0 + $0x48] sm:$0xff]  ;;  %v25_v41 = vld [vmem:[%s849_s0 + $0x58] sm:$0xff]  ;;  %v22_v42 = vld [vmem:[%s849_s0 + $0x40] sm:$0xff] }
  0x1a   :  { %471 = vmatprep.subr.bf16.mxu0 %v470_v14  ;;  %v24_v43 = vld [vmem:[%s849_s0 + $0x50] sm:$0xff]  ;;  %v27_v44 = vld [vmem:[%s849_s0 + $0x68] sm:$0xff]  ;;  %v29_v45 = vld [vmem:[%s849_s0 + $0x78] sm:$0xff] }
  0x1b   :  { %501 = vmatpush3.bf16.msra.mxu1 %v500_v13  ;;  %v26_v46 = vld [vmem:[%s849_s0 + $0x60] sm:$0xff]  ;;  %v28_v47 = vld [vmem:[%s849_s0 + $0x70] sm:$0xff]  ;;  %v31_v48 = vld [vmem:[%s849_s0 + $0x88] sm:$0xff] }
  0x1c   :  { %503 = vmatprep.subr.bf16.mxu1 %v502_v18  ;;  %v33_v49 = vld [vmem:[%s849_s0 + $0x98] sm:$0xff]  ;;  %v30_v50 = vld [vmem:[%s849_s0 + $0x80] sm:$0xff]  ;;  %v32_v51 = vld [vmem:[%s849_s0 + $0x90] sm:$0xff] }
  0x1d   :  { %473 = vmatpush3.bf16.msra.mxu0 %v472_v24  ;;  %v35_v52 = vld [vmem:[%s849_s0 + $0xa8] sm:$0xff]  ;;  %v37_v53 = vld [vmem:[%s849_s0 + $0xb8] sm:$0xff]  ;;  %v34_v54 = vld [vmem:[%s849_s0 + $0xa0] sm:$0xff] }
  0x1e   :  { %475 = vmatprep.subr.bf16.mxu0 %v474_v26  ;;  %v36_v55 = vld [vmem:[%s849_s0 + $0xb0] sm:$0xff]  ;;  %v39_v56 = vld [vmem:[%s849_s0 + $0xc8] sm:$0x3]  ;;  %v41_v57 = vld [vmem:[%s849_s0 + $0xd8] sm:$0x3] }
  0x1f   :  { %505 = vmatpush3.bf16.msra.mxu1 %v504_v25  ;;  %v38_v58 = vld [vmem:[%s849_s0 + $0xc0] sm:$0x3]  ;;  %v40_v59 = vld [vmem:[%s849_s0 + $0xd0] sm:$0x3] }
  0x20   :  { %507 = vmatprep.subr.bf16.mxu1 %v506_v29  ;;  %v106_v63 = vld [vmem:[%s850_s2] sm:$0x3] }
  0x21   :  { %477 = vmatpush3.bf16.msra.mxu0 %v476_v32  ;;  %v809_v1 = vrot.slane %v106_v63, %v109_v62  ;;  %v812_v9 = vrot.slane %v106_v63, %v313_v2 }
  0x23   :  { %509 = vmatpush3.bf16.msra.mxu1 %v508_v33 }
  0x24   :  { %176 = vmatmul.mubr.f32.vlgmr.msra.gmra.mrb[0].mxu0 %v14_v34 }
  0x25   :  { %180 = vmatprep.mubr.f32.mxu0 %v19_v36 }
  0x26   :  { %276 = vmatmul.mubr.f32.vlgmr.msra.gmra.mrb[0].mxu1 %v16_v35 }
  0x27   :  { %280 = vmatprep.mubr.f32.mxu1 %v21_v37 }
  0x28   :  { %181 = vmatmul.mubr.f32.gmra.mrb[2].mxu0 %v18_v38 }
  0x29   :  { %185 = vmatprep.mubr.f32.mxu0 %v23_v40 }
  0x2a   :  { %281 = vmatmul.mubr.f32.gmra.mrb[2].mxu1 %v20_v39 }
  0x2b   :  { %285 = vmatprep.mubr.f32.mxu1 %v25_v41 }
  0x2c   :  { %186 = vmatmul.mubr.f32.gmra.mrb[4].mxu0 %v22_v42 }
  0x2d   :  { %190 = vmatprep.mubr.f32.mxu0 %v27_v44 }
  0x2e   :  { %286 = vmatmul.mubr.f32.gmra.mrb[4].mxu1 %v24_v43 }
  0x2f   :  { %290 = vmatprep.mubr.f32.mxu1 %v29_v45 }
  0x30   :  { %191 = vmatmul.mubr.f32.gmra.mrb[6].mxu0 %v26_v46 }
  0x31   :  { %195 = vmatprep.mubr.f32.mxu0 %v31_v48 }
  0x32   :  { %291 = vmatmul.mubr.f32.gmra.mrb[6].mxu1 %v28_v47 }
  0x33   :  { %295 = vmatprep.mubr.f32.mxu1 %v33_v49 }
  0x34   :  { %196 = vmatmul.mubr.f32.gmra.mrb[8].mxu0 %v30_v50 }
  0x35   :  { %200 = vmatprep.mubr.f32.mxu0 %v35_v52 }
  0x36   :  { %296 = vmatmul.mubr.f32.gmra.mrb[8].mxu1 %v32_v51 }
  0x37   :  { %300 = vmatprep.mubr.f32.mxu1 %v37_v53 }
  0x38   :  { %201 = vmatmul.mubr.f32.gmra.mrb[10].mxu0 %v34_v54 }
  0x39   :  { %205 = vmatprep.mubr.f32.mxu0 %v39_v56 }
  0x3a   :  { %301 = vmatmul.mubr.f32.gmra.mrb[10].mxu1 %v36_v55 }
  0x3b   :  { %305 = vmatprep.mubr.f32.mxu1 %v41_v57 }
  0x3c   :  { %206 = vmatmul.mubr.f32.gmra.mrb[12].mxu0 %v38_v58 }
  0x3e   :  { %306 = vmatmul.mubr.f32.gmra.mrb[12].mxu1 %v40_v59 }
  0xf7   :  { %v372_v0 = vpop.f32.mrb[0].mxu0 }
  0xf8   :  { %v373_v3 = vpop.f32.mrb[1].mxu0 }
  0xf9   :  { %v425_v4 = vpop.f32.mrb[0].mxu1  ;;  %v374_v5 = vadd.f32 %v373_v3, %v372_v0 }
  0xfa   :  { %v426_v6 = vpop.f32.mrb[1].mxu1 }
  0xfb   :  { %v427_v7 = vadd.f32 %v426_v6, %v425_v4  ;;  %v178_v8 = vadd.f32 %v374_v5, %v809_v1  ;;  %v375_v10 = vpop.f32.mrb[2].mxu0 }
  0xfc   :  { %v376_v11 = vpop.f32.mrb[3].mxu0 }
  0xfd   :  { %v428_v12 = vpop.f32.mrb[2].mxu1  ;;  %v278_v13 = vadd.f32 %v427_v7, %v178_v8  ;;  %v377_v14 = vadd.f32 %v376_v11, %v375_v10 }
  0xfe   :  { %v429_v15 = vpop.f32.mrb[3].mxu1 }
  0xff   :  { %v430_v16 = vadd.f32 %v429_v15, %v428_v12  ;;  %v315_v17 = vmul.f32 %v812_v9, %v278_v13  ;;  %v183_v18 = vadd.f32 %v377_v14, %v809_v1  ;;  %v378_v19 = vpop.f32.mrb[4].mxu0 }
 0x100   :  { %v379_v20 = vpop.f32.mrb[5].mxu0 }
 0x101   :  { %v431_v21 = vpop.f32.mrb[4].mxu1  ;;  %v322_v22 = vmax.f32 %v278_v13, %v315_v17  ;;  %v283_v23 = vadd.f32 %v430_v16, %v183_v18  ;;  %v380_v24 = vadd.f32 %v379_v20, %v378_v19 }
 0x102   :  { %v432_v25 = vpop.f32.mrb[5].mxu1 }
 0x103   :  { %v433_v26 = vadd.f32 %v432_v25, %v431_v21  ;;  %329 = vst [vmem:[%s851_s3] sm:$0xff] %v322_v22  ;;  %v316_v27 = vmul.f32 %v812_v9, %v283_v23  ;;  %v188_v28 = vadd.f32 %v380_v24, %v809_v1  ;;  %v381_v29 = vpop.f32.mrb[6].mxu0 }
 0x104   :  { %v382_v30 = vpop.f32.mrb[7].mxu0 }
 0x105   :  { %v434_v31 = vpop.f32.mrb[6].mxu1  ;;  %v323_v32 = vmax.f32 %v283_v23, %v316_v27  ;;  %v288_v33 = vadd.f32 %v433_v26, %v188_v28  ;;  %v383_v34 = vadd.f32 %v382_v30, %v381_v29 }
 0x106   :  { %v435_v35 = vpop.f32.mrb[7].mxu1 }
 0x107   :  { %v436_v36 = vadd.f32 %v435_v35, %v434_v31  ;;  %330 = vst [vmem:[%s851_s3 + $0x8] sm:$0xff] %v323_v32  ;;  %v317_v37 = vmul.f32 %v812_v9, %v288_v33  ;;  %v193_v38 = vadd.f32 %v383_v34, %v809_v1  ;;  %v384_v39 = vpop.f32.mrb[8].mxu0 }
 0x108   :  { %v385_v40 = vpop.f32.mrb[9].mxu0 }
 0x109   :  { %v437_v41 = vpop.f32.mrb[8].mxu1  ;;  %v324_v42 = vmax.f32 %v288_v33, %v317_v37  ;;  %v293_v43 = vadd.f32 %v436_v36, %v193_v38  ;;  %v386_v44 = vadd.f32 %v385_v40, %v384_v39 }
 0x10a   :  { %v438_v45 = vpop.f32.mrb[9].mxu1 }
 0x10b   :  { %v439_v46 = vadd.f32 %v438_v45, %v437_v41  ;;  %331 = vst [vmem:[%s851_s3 + $0x10] sm:$0xff] %v324_v42  ;;  %v318_v47 = vmul.f32 %v812_v9, %v293_v43  ;;  %v198_v48 = vadd.f32 %v386_v44, %v809_v1  ;;  %v387_v49 = vpop.f32.mrb[10].mxu0 }
 0x10c   :  { %v388_v50 = vpop.f32.mrb[11].mxu0 }
 0x10d   :  { %v440_v51 = vpop.f32.mrb[10].mxu1  ;;  %v325_v52 = vmax.f32 %v293_v43, %v318_v47  ;;  %v298_v53 = vadd.f32 %v439_v46, %v198_v48  ;;  %v389_v54 = vadd.f32 %v388_v50, %v387_v49 }
 0x10e   :  { %v441_v55 = vpop.f32.mrb[11].mxu1 }
 0x10f   :  { %v442_v56 = vadd.f32 %v441_v55, %v440_v51  ;;  %332 = vst [vmem:[%s851_s3 + $0x18] sm:$0xff] %v325_v52  ;;  %v319_v57 = vmul.f32 %v812_v9, %v298_v53  ;;  %v203_v58 = vadd.f32 %v389_v54, %v809_v1  ;;  %v390_v59 = vpop.f32.mrb[12].mxu0 }
 0x110   :  { %v391_v60 = vpop.f32.mrb[13].mxu0 }
 0x111   :  { %v443_v61 = vpop.f32.mrb[12].mxu1  ;;  %v326_v62 = vmax.f32 %v298_v53, %v319_v57  ;;  %v303_v63 = vadd.f32 %v442_v56, %v203_v58  ;;  %v392_v0 = vadd.f32 %v391_v60, %v390_v59 }
 0x112   :  { %v444_v2 = vpop.f32.mrb[13].mxu1 }
 0x113   :  { %v445_v3 = vadd.f32 %v444_v2, %v443_v61  ;;  %333 = vst [vmem:[%s851_s3 + $0x20] sm:$0xff] %v326_v62  ;;  %v320_v4 = vmul.f32 %v812_v9, %v303_v63  ;;  %v208_v5 = vadd.f32 %v392_v0, %v809_v1 }
 0x115   :  { %v327_v6 = vmax.f32 %v303_v63, %v320_v4  ;;  %v308_v7 = vadd.f32 %v445_v3, %v208_v5 }
 0x117   :  { %334 = vst [vmem:[%s851_s3 + $0x28] sm:$0xff] %v327_v6  ;;  %v321_v8 = vmul.f32 %v812_v9, %v308_v7 }
 0x119   :  { %v328_v10 = vmax.f32 %v308_v7, %v321_v8 }
 0x11b   :  { %335 = vst [vmem:[%s851_s3 + $0x30] sm:$0x3] %v328_v10 }

</bundles_post_ra>
